<compile_context>
chip_gen: v5e
topology: v5e:2x2
jax: 0.10.0
libtpu: 0.0.40
codegen_flags: <defaults>
</compile_context>

<pallas_src>
import functools
import math

import jax
import jax.numpy as jnp
from jax.experimental import pallas as pl
from jax.experimental.pallas import tpu as pltpu


def _sdpa_kernel(q_ref, k_ref, v_ref, o_ref, m_sc, l_sc, acc_sc, *, scale):
    ki = pl.program_id(2)

    # init accumulators on the first kv step for this (batch, q-tile)
    @pl.when(ki == 0)
    def _():
        m_sc[...] = jnp.full(m_sc.shape, -jnp.inf, dtype=jnp.float32)
        l_sc[...] = jnp.zeros(l_sc.shape, dtype=jnp.float32)
        acc_sc[...] = jnp.zeros(acc_sc.shape, dtype=jnp.float32)

    q = q_ref[0]                       # (TQ, D)
    k = k_ref[0]                       # (TK, D)
    v = v_ref[0]                       # (TK, D)

    # scores = Q @ K^T  (MXU, f32 accumulate)
    s = jax.lax.dot_general(q, k, (((1,), (1,)), ((), ())),
                            preferred_element_type=jnp.float32)   # (TQ, TK)
    if scale is not None:
        s = s * scale

    # online softmax update
    m_prev = m_sc[...]                                  # (TQ, 1)
    m_new = jnp.maximum(m_prev, s.max(axis=-1, keepdims=True))
    alpha = jnp.exp(m_prev - m_new)                     # rescale of old stats
    p = jnp.exp(s - m_new)                              # (TQ, TK), EUP

    l_sc[...] = alpha * l_sc[...] + p.sum(axis=-1, keepdims=True)
    acc_sc[...] = alpha * acc_sc[...] + jnp.dot(
        p.astype(v.dtype), v, preferred_element_type=jnp.float32)  # (TQ, D)
    m_sc[...] = m_new

    # finalize on the last kv step
    @pl.when(ki == pl.num_programs(2) - 1)
    def _():
        o_ref[0] = (acc_sc[...] / l_sc[...]).astype(o_ref.dtype)


def scaled_dot_product_attention(q, k, v, scale=None, *, tile_q=256, tile_k=256):
    """q: (B, Lq, D), k/v: (B, Lk, D). Returns context (B, Lq, D).

    Matches torch: softmax(Q @ K^T [* scale], dim=-1) @ V  (scale applied only
    if truthy, as in the reference module)."""
    B, SQ, D = q.shape
    _, SK, _ = k.shape
    tile_q = min(tile_q, SQ)
    tile_k = min(tile_k, SK)
    assert SQ % tile_q == 0 and SK % tile_k == 0, "seq lens must divide tiles"

    scale_static = float(scale) if scale else None   # mirrors `if scale:` in torch

    grid = (B, SQ // tile_q, SK // tile_k)

    return pl.pallas_call(
        functools.partial(_sdpa_kernel, scale=scale_static),
        out_shape=jax.ShapeDtypeStruct((B, SQ, D), q.dtype),
        grid_spec=pltpu.PrefetchScalarGridSpec(
            num_scalar_prefetch=0,
            grid=grid,
            in_specs=[
                pl.BlockSpec((1, tile_q, D), lambda b, qi, ki: (b, qi, 0)),  # Q
                pl.BlockSpec((1, tile_k, D), lambda b, qi, ki: (b, ki, 0)),  # K
                pl.BlockSpec((1, tile_k, D), lambda b, qi, ki: (b, ki, 0)),  # V
            ],
            out_specs=pl.BlockSpec((1, tile_q, D), lambda b, qi, ki: (b, qi, 0)),
            scratch_shapes=[
                pltpu.VMEM((tile_q, 1), jnp.float32),   # running max m
                pltpu.VMEM((tile_q, 1), jnp.float32),   # running denom l
                pltpu.VMEM((tile_q, D), jnp.float32),   # output accumulator
            ],
        ),
        compiler_params=pltpu.CompilerParams(
            dimension_semantics=("parallel", "parallel", "arbitrary")),
    )(q, k, v)


def _reference(q, k, v, scale=None):
    att = jnp.einsum("bqd,bkd->bqk", q, k)
    if scale:
        att = att * scale
    att = jax.nn.softmax(att, axis=-1)
    return jnp.einsum("bqk,bkd->bqd", att, v)


if __name__ == "__main__":
    B, SQ, SK, D = 2, 256, 256, 128   # lane-dense head dim, MXU-sized tiles

    key = jax.random.PRNGKey(0)
    kq, kk, kv = jax.random.split(key, 3)
    q = jax.random.normal(kq, (B, SQ, D), dtype=jnp.float32)
    k = jax.random.normal(kk, (B, SK, D), dtype=jnp.float32)
    v = jax.random.normal(kv, (B, SK, D), dtype=jnp.float32)

    scale = 1.0 / math.sqrt(D)

    # scaled path (grid has 2 kv steps -> exercises the online-softmax carry)
    out = scaled_dot_product_attention(q, k, v, scale, tile_q=128, tile_k=128)
    out = jax.block_until_ready(out)
    ref = _reference(q, k, v, scale)
    assert out.shape == (B, SQ, D)
    assert jnp.allclose(out, ref, atol=2e-5, rtol=2e-5), "mismatch (scaled)"

    # unscaled path (scale=None, matching `if scale:` semantics)
    out2 = scaled_dot_product_attention(q, k, v, None, tile_q=128, tile_k=128)
    out2 = jax.block_until_ready(out2)
    ref2 = _reference(q, k, v, None)
    assert jnp.allclose(out2, ref2, atol=2e-5, rtol=2e-5), "mismatch (unscaled)"

    print("KERNEL_OK")
</pallas_src>

<mosaic_0001>
module attributes {stable_mosaic.version = 11 : i64} {
  func.func @_sdpa_kernel(%arg0: i32, %arg1: i32, %arg2: i32, %arg3: memref<1x128x128xf32, #tpu.memory_space<vmem>>, %arg4: memref<1x128x128xf32, #tpu.memory_space<vmem>>, %arg5: memref<1x128x128xf32, #tpu.memory_space<vmem>>, %arg6: memref<1x128x128xf32, #tpu.memory_space<vmem>>, %arg7: memref<128x1xf32, #tpu.memory_space<vmem>>, %arg8: memref<128x1xf32, #tpu.memory_space<vmem>>, %arg9: memref<128x128xf32, #tpu.memory_space<vmem>>) attributes {dimension_semantics = [#tpu.dimension_semantics<parallel>, #tpu.dimension_semantics<parallel>, #tpu.dimension_semantics<arbitrary>], iteration_bounds = array<i64: 2, 2, 2>, scalar_prefetch = 0 : i64, scratch_operands = 3 : i64, tpu.core_type = #tpu.core_type<tc>, window_params = [{transform_indices = @transform_0, window_bounds = array<i64: 1, 128, 128>}, {transform_indices = @transform_1, window_bounds = array<i64: 1, 128, 128>}, {transform_indices = @transform_2, window_bounds = array<i64: 1, 128, 128>}, {transform_indices = @transform_3, window_bounds = array<i64: 1, 128, 128>}]} {
    %c0_i32 = arith.constant 0 : i32
    %0 = arith.cmpi eq, %arg2, %c0_i32 : i32
    %1 = arith.extui %0 : i1 to i32
    %c0_i32_0 = arith.constant 0 : i32
    %2 = arith.cmpi ne, %1, %c0_i32_0 : i32
    scf.if %2 {
      %cst_26 = arith.constant 0xFF800000 : f32
      %37 = vector.broadcast %cst_26 : f32 to vector<128x1xf32>
      %c0_27 = arith.constant 0 : index
      %c0_28 = arith.constant 0 : index
      %38 = vector.load %arg7[%c0_27, %c0_28] : memref<128x1xf32, #tpu.memory_space<vmem>>, vector<128x1xf32>
      tpu.vector_store %arg7[%c0_27, %c0_28], %37 {strides = array<i32>} : memref<128x1xf32, #tpu.memory_space<vmem>>, vector<128x1xf32>,
      %cst_29 = arith.constant 0.000000e+00 : f32
      %39 = vector.broadcast %cst_29 : f32 to vector<128x1xf32>
      %c0_30 = arith.constant 0 : index
      %c0_31 = arith.constant 0 : index
      %40 = vector.load %arg8[%c0_30, %c0_31] : memref<128x1xf32, #tpu.memory_space<vmem>>, vector<128x1xf32>
      tpu.vector_store %arg8[%c0_30, %c0_31], %39 {strides = array<i32>} : memref<128x1xf32, #tpu.memory_space<vmem>>, vector<128x1xf32>,
      %cst_32 = arith.constant 0.000000e+00 : f32
      %41 = vector.broadcast %cst_32 : f32 to vector<128x128xf32>
      %c0_33 = arith.constant 0 : index
      %c0_34 = arith.constant 0 : index
      %42 = vector.load %arg9[%c0_33, %c0_34] : memref<128x128xf32, #tpu.memory_space<vmem>>, vector<128x128xf32>
      tpu.vector_store %arg9[%c0_33, %c0_34], %41 {strides = array<i32>} : memref<128x128xf32, #tpu.memory_space<vmem>>, vector<128x128xf32>,
    } else {
    }
    %c0 = arith.constant 0 : index
    %c0_1 = arith.constant 0 : index
    %c0_2 = arith.constant 0 : index
    %3 = vector.load %arg3[%c0, %c0_1, %c0_2] : memref<1x128x128xf32, #tpu.memory_space<vmem>>, vector<1x128x128xf32>
    %4 = vector.shape_cast %3 : vector<1x128x128xf32> to vector<128x128xf32>
    %c0_3 = arith.constant 0 : index
    %c0_4 = arith.constant 0 : index
    %c0_5 = arith.constant 0 : index
    %5 = vector.load %arg4[%c0_3, %c0_4, %c0_5] : memref<1x128x128xf32, #tpu.memory_space<vmem>>, vector<1x128x128xf32>
    %6 = vector.shape_cast %5 : vector<1x128x128xf32> to vector<128x128xf32>
    %c0_6 = arith.constant 0 : index
    %c0_7 = arith.constant 0 : index
    %c0_8 = arith.constant 0 : index
    %7 = vector.load %arg5[%c0_6, %c0_7, %c0_8] : memref<1x128x128xf32, #tpu.memory_space<vmem>>, vector<1x128x128xf32>
    %8 = vector.shape_cast %7 : vector<1x128x128xf32> to vector<128x128xf32>
    %cst = arith.constant dense<0.000000e+00> : vector<128x128xf32>
    %9 = tpu.matmul %4, %6, %cst {dimension_numbers = #tpu.dot_dimension_numbers<[1], [1], [0], [0], [0, 0, 1, 0], [], []>} : vector<128x128xf32>, vector<128x128xf32>, vector<128x128xf32> -> vector<128x128xf32>
    %cst_9 = arith.constant 0.0883883461 : f32
    %10 = vector.broadcast %cst_9 : f32 to vector<128x128xf32>
    %11 = arith.mulf %9, %10 : vector<128x128xf32>
    %c0_10 = arith.constant 0 : index
    %c0_11 = arith.constant 0 : index
    %12 = vector.load %arg7[%c0_10, %c0_11] : memref<128x1xf32, #tpu.memory_space<vmem>>, vector<128x1xf32>
    %cst_12 = arith.constant dense<0xFF800000> : vector<128xf32>
    %13 = vector.multi_reduction <maximumf>, %11, %cst_12 [1] : vector<128x128xf32> to vector<128xf32>
    %14 = vector.shape_cast %13 : vector<128xf32> to vector<128x1xf32>
    %15 = arith.maximumf %12, %14 : vector<128x1xf32>
    %16 = arith.subf %12, %15 : vector<128x1xf32>
    %17 = math.exp %16 : vector<128x1xf32>
    %18 = vector.broadcast %15 : vector<128x1xf32> to vector<128x128xf32>
    %19 = arith.subf %11, %18 : vector<128x128xf32>
    %20 = math.exp %19 : vector<128x128xf32>
    %c0_13 = arith.constant 0 : index
    %c0_14 = arith.constant 0 : index
    %21 = vector.load %arg8[%c0_13, %c0_14] : memref<128x1xf32, #tpu.memory_space<vmem>>, vector<128x1xf32>
    %22 = arith.mulf %17, %21 : vector<128x1xf32>
    %cst_15 = arith.constant dense<0.000000e+00> : vector<128xf32>
    %23 = vector.multi_reduction <add>, %20, %cst_15 [1] : vector<128x128xf32> to vector<128xf32>
    %24 = vector.shape_cast %23 : vector<128xf32> to vector<128x1xf32>
    %25 = arith.addf %22, %24 : vector<128x1xf32>
    %c0_16 = arith.constant 0 : index
    %c0_17 = arith.constant 0 : index
    %26 = vector.load %arg8[%c0_16, %c0_17] : memref<128x1xf32, #tpu.memory_space<vmem>>, vector<128x1xf32>
    tpu.vector_store %arg8[%c0_16, %c0_17], %25 {strides = array<i32>} : memref<128x1xf32, #tpu.memory_space<vmem>>, vector<128x1xf32>,
    %c0_18 = arith.constant 0 : index
    %c0_19 = arith.constant 0 : index
    %27 = vector.load %arg9[%c0_18, %c0_19] : memref<128x128xf32, #tpu.memory_space<vmem>>, vector<128x128xf32>
    %28 = vector.broadcast %17 : vector<128x1xf32> to vector<128x128xf32>
    %29 = arith.mulf %28, %27 : vector<128x128xf32>
    %cst_20 = arith.constant dense<0.000000e+00> : vector<128x128xf32>
    %30 = tpu.matmul %20, %8, %cst_20 {dimension_numbers = #tpu.dot_dimension_numbers<[1], [0], [0], [1], [0, 0, 1, 1], [], []>} : vector<128x128xf32>, vector<128x128xf32>, vector<128x128xf32> -> vector<128x128xf32>
    %31 = arith.addf %29, %30 : vector<128x128xf32>
    %c0_21 = arith.constant 0 : index
    %c0_22 = arith.constant 0 : index
    %32 = vector.load %arg9[%c0_21, %c0_22] : memref<128x128xf32, #tpu.memory_space<vmem>>, vector<128x128xf32>
    tpu.vector_store %arg9[%c0_21, %c0_22], %31 {strides = array<i32>} : memref<128x128xf32, #tpu.memory_space<vmem>>, vector<128x128xf32>,
    %c0_23 = arith.constant 0 : index
    %c0_24 = arith.constant 0 : index
    %33 = vector.load %arg7[%c0_23, %c0_24] : memref<128x1xf32, #tpu.memory_space<vmem>>, vector<128x1xf32>
    tpu.vector_store %arg7[%c0_23, %c0_24], %15 {strides = array<i32>} : memref<128x1xf32, #tpu.memory_space<vmem>>, vector<128x1xf32>,
    %c1_i32 = arith.constant 1 : i32
    %34 = arith.cmpi eq, %arg2, %c1_i32 : i32
    %35 = arith.extui %34 : i1 to i32
    %c0_i32_25 = arith.constant 0 : i32
    %36 = arith.cmpi ne, %35, %c0_i32_25 : i32
    scf.if %36 {
      %c0_26 = arith.constant 0 : index
      %c0_27 = arith.constant 0 : index
      %37 = vector.load %arg9[%c0_26, %c0_27] : memref<128x128xf32, #tpu.memory_space<vmem>>, vector<128x128xf32>
      %c0_28 = arith.constant 0 : index
      %c0_29 = arith.constant 0 : index
      %38 = vector.load %arg8[%c0_28, %c0_29] : memref<128x1xf32, #tpu.memory_space<vmem>>, vector<128x1xf32>
      %39 = vector.broadcast %38 : vector<128x1xf32> to vector<128x128xf32>
      %40 = arith.divf %37, %39 : vector<128x128xf32>
      %c0_30 = arith.constant 0 : index
      %c0_31 = arith.constant 0 : index
      %c0_32 = arith.constant 0 : index
      %41 = vector.load %arg6[%c0_30, %c0_31, %c0_32] : memref<1x128x128xf32, #tpu.memory_space<vmem>>, vector<1x128x128xf32>
      %42 = vector.shape_cast %41 : vector<1x128x128xf32> to vector<128x128xf32>
      %43 = vector.shape_cast %40 : vector<128x128xf32> to vector<1x128x128xf32>
      tpu.vector_store %arg6[%c0_30, %c0_31, %c0_32], %43 {strides = array<i32>} : memref<1x128x128xf32, #tpu.memory_space<vmem>>, vector<1x128x128xf32>,
    } else {
    }
    return
  }
  func.func @transform_0(%arg0: i32, %arg1: i32, %arg2: i32) -> (i32, i32, i32) {
    %c0_i32 = arith.constant 0 : i32
    %c0_i32_0 = arith.constant 0 : i32
    return %arg0, %arg1, %c0_i32 : i32, i32, i32
  }
  func.func @transform_1(%arg0: i32, %arg1: i32, %arg2: i32) -> (i32, i32, i32) {
    %c0_i32 = arith.constant 0 : i32
    %c0_i32_0 = arith.constant 0 : i32
    return %arg0, %arg2, %c0_i32 : i32, i32, i32
  }
  func.func @transform_2(%arg0: i32, %arg1: i32, %arg2: i32) -> (i32, i32, i32) {
    %c0_i32 = arith.constant 0 : i32
    %c0_i32_0 = arith.constant 0 : i32
    return %arg0, %arg2, %c0_i32 : i32, i32, i32
  }
  func.func @transform_3(%arg0: i32, %arg1: i32, %arg2: i32) -> (i32, i32, i32) {
    %c0_i32 = arith.constant 0 : i32
    %c0_i32_0 = arith.constant 0 : i32
    return %arg0, %arg1, %c0_i32 : i32, i32, i32
  }
}

</mosaic_0001>

<bundles_post_ra>
// kernel: tpu_custom_call.1
= control target key start
LH: loop header
LB: loop body
LE: loop exit
PB: predicated region body
PF: predicated region fallthrough
CT: control target
= control target key end

     0   :  { %s3028_s0 = inlined_call_operand.hbm [shape: f32[2,256,128], index: 0, kind: input, shape index: {}]   ;;  %s3029_s1 = inlined_call_operand.hbm [shape: f32[2,256,128], index: 1, kind: input, shape index: {}]   ;;  %s3030_s2 = inlined_call_operand.hbm [shape: f32[2,256,128], index: 2, kind: input, shape index: {}]   ;;  %s3031_s3 = inlined_call_operand.hbm [shape: f32[2,256,128], index: 3, kind: output, shape index: {}]  }
   0x1   :  { %3053 = sst [smem:[#allocation30_spill]] %s3029_s1 }
   0x2   :  { %3054 = sst [smem:[#allocation31_spill]] %s3030_s2 }
   0x3   :  { %3055 = sst [smem:[#allocation32_spill]] %s3031_s3 }
   0x4   :  { %8 = vsyncpa [#allocation6], 0 }
   0x5   :  { %10 = vsyncpa [#allocation6 + $0x1], 0 }
   0x6   :  { %11 = vsyncpa [#allocation9], 0 }
   0x7   :  { %13 = vsyncpa [#allocation9 + $0x1], 0 }
   0x8   :  { %14 = vsyncpa [#allocation7], 0 }
   0x9   :  { %16 = vsyncpa [#allocation7 + $0x1], 0  ;;  %s2181_s12 = smov 0   ;;  %s2183_s13 = smov 0  }
   0xa   :  { %s2185_s14 = smov 0   ;;  %s2187_s15 = smov 0  }
   0xb   :  { %s2189_s16 = smov 0   ;;  %s2191_s17 = smov 0  }
   0xc   :  { %s2193_s18 = smov 0   ;;  %s2195_s19 = smov 0  }
   0xd   :  { %s2197_s20 = smov 0   ;;  %s2199_s21 = smov 0  }
   0xe   :  { %s2201_s22 = smov 0   ;;  %s2203_s23 = smov 0  }
   0xf   :  { %s2205_s24 = smov 0  }
  0x10 LB: > { %3056 = sst [smem:[#allocation15_spill]] %s2107_s13  ;;  %s2245_s25 = sadd.s32 4294967295, %s2151_s24   ;;  %s2151_s24 = sphi %s2205_s24, %s22_s24   ;;  %s2147_s23 = sphi %s2203_s23, %s3129_s23   ;;  %s2143_s22 = sphi %s2201_s22, %s3119_s22   ;;  %s2139_s21 = sphi %s2199_s21, %s3128_s21   ;;  %s2135_s20 = sphi %s2197_s20, %s3127_s20   ;;  %s2131_s19 = sphi %s2195_s19, %s3118_s19   ;;  %s2127_s18 = sphi %s2193_s18, %s3126_s18   ;;  %s2123_s17 = sphi %s2191_s17, %s3125_s17   ;;  %s2119_s16 = sphi %s2189_s16, %s3124_s16   ;;  %s2115_s15 = sphi %s2187_s15, %s3123_s15   ;;  %s2111_s14 = sphi %s2185_s14, %s3122_s14   ;;  %s2107_s13 = sphi %s2183_s13, %s3121_s13   ;;  %s2103_s12 = sphi %s2181_s12, %s3115_s12  }
  0x11   : > { %3057 = sst [smem:[#allocation16_spill]] %s2115_s15  ;;  %s34_s26 = sadd.s32 1, %s2139_s21 }
  0x12   : > { %3058 = sst [smem:[#allocation17_spill]] %s2119_s16  ;;  %p2248_p0 = scmp.ge.s32.totalorder %s34_s26, 2 }
  0x13   : > { %3059 = sst [smem:[#allocation18_spill]] %s2127_s18  ;;  %p58_p1 = scmp.eq.s32.totalorder %s2151_s24, 0 }
  0x14   : > { %3060 = sst [smem:[#allocation19_spill]] %s2131_s19  ;;  %p64_p2 = scmp.eq.s32.totalorder %s2245_s25, 0 }
  0x15   : > { %3061 = sst [smem:[#allocation20_spill]] %s2135_s20  ;;  %s3131_s26 = smov (%p2248_p0, %s34_s26), 0 }
  0x16   : > { %3062 = sst [smem:[#allocation21_spill]] %s2143_s22  ;;  %p85_p3 = scmp.ne.s32.totalorder %s2111_s14, %s2107_s13 }
  0x17   : > { %3063 = sst [smem:[#allocation22_spill]] %s2245_s25  ;;  %p91_p4 = scmp.ne.s32.totalorder %s2107_s13, %s2103_s12 }
  0x18   : > { %p2265_p5 = por %p85_p3, %p58_p1  ;;  %p1703_p7 = scmp.lt.s32.totalorder %s2151_s24, 8 }
  0x19   : > { %p2271_p6 = por %p91_p4, %p64_p2  ;;  %s3037_s5 = sshll.u32 %s2147_s23, 5 }
  0x1a   : > { %s195_s6 = sand.u32 1, %s2151_s24   ;;  %s197_s7 = sand.u32 1, %s2111_s14  }
  0x1b   : > { %s3066_s4 = scalar_select %p2271_p6, 1, 0 }
  0x1c   : > { %s1596_s8 = sshll.u32 %s197_s7, 7  ;;  %s1597_s9 = sshll.u32 %s2139_s21, 4 }
  0x1d   : > { %3067 = sst [smem:[#allocation23_spill]] %s3066_s4  ;;  %s204_s10 = sadd.s32 %s1597_s9, %s3037_s5 }
  0x1e   : > { %s1599_s11 = sshll.u32 %s204_s10, 3  ;;  %s199_s12 = scalar_lea.vmem [#allocation8], %s1596_s8 }
  0x1f   : > { %s209_s29 = sshll.u32 %s199_s12, 4  ;;  %s3068_s1 = sld [smem:[#allocation30_spill]]  ;;  %s210_s29 = int_to_ptr.vmem [resolvable:$true] %s209_s29 }
  0x20   : > { %p2289_p8 = pnand %p1703_p7, %p2265_p5  ;;  %s3070_s2 = sld [smem:[#allocation31_spill]] }
  0x21   : > { %s2296_s28 = scalar_lea.sflag [#allocation9], %s195_s6  ;;  %s3035_s30 = smov 8  }
  0x22   : > { %s223_s6 = scalar_lea.vmem [#allocation10], %s1596_s8  ;;  %p1604_p9 = scmp.ge.s32.totalorder %s2151_s24, 1 }
  0x23   : > { %s2308_s9 = sshll.u32 %s223_s6, 4  ;;  %p241_p10 = scmp.lt.s32.totalorder %s2151_s24, 9  ;;  %s234_s9 = int_to_ptr.vmem [resolvable:$true] %s2308_s9 }
  0x24   : > { %p57_p12 = scmp.ne.s32.totalorder %s2123_s17, %s2119_s16  ;;  %p63_p13 = scmp.ne.s32.totalorder %s2119_s16, %s2115_s15 }
  0x25   : > { %s206_s20 = scalar_lea.hbm %s3068_s1, %s1599_s11  ;;  %p2312_p11 = pnand %p1604_p9, %p241_p10 }
  0x26   : > { %s207_s19 = sshll.u32 %s206_s20, 4  ;;  %s230_s3 = scalar_lea.hbm %s3070_s2, %s1599_s11  ;;  %s208_s19 = int_to_ptr.hbm [resolvable:$true] %s207_s19 }
  0x27   : > { %s3033_s20 = smov 128   ;;  %s231_s11 = sshll.u32 %s230_s3, 4  ;;  %s2306_s11 = int_to_ptr.hbm [resolvable:$true] %s231_s11 }
  0x28   : > { %1695 = dma.hbm_to_vmem [thread:$0]  (!%p2289_p8), %s208_s19, 2048, %s210_s29, %s2296_s28, %s3033_s20, %s3033_s20, %s3035_s30  }
  0x29   : > { %s3071_s10 = scalar_select %p2312_p11, 1, 0 }
  0x2a   : > { %s1589_s19 = sadd.s32 4294967294, %s2151_s24   ;;  %s37_s29 = sadd.s32 1, %s2143_s22 }
  0x2b   : > { %3072 = sst [smem:[#allocation24_spill]] %s3071_s10  ;;  %s50_s3 = sadd.s32 1, %s2123_s17 }
  0x2c   : > { %s3133_s29 = smov (!%p2248_p0, %s37_s29), %s2143_s22  ;;  %p145_p4 = scmp.eq.s32.totalorder %s2245_s25, 7 }
  0x2d   : > { %p39_p3 = scmp.ge.s32.totalorder %s3133_s29, 2  ;;  %p2329_p5 = por %p58_p1, %p57_p12 }
  0x2e   : > { %p2338_p9 = por %p64_p2, %p63_p13  ;;  %s3077_s27 = sadd.s32 1, %s2147_s23 }
  0x2f   : > { %s3135_s29 = smov (%p39_p3, %s3133_s29), 0  ;;  %s3137_s27 = smov (!%p39_p3, %s3077_s27), %s2147_s23 }
  0x30   : > { %s3074_s6 = scalar_select %p2338_p9, 1, 0 }
  0x31   : > { %3076 = sst [smem:[#allocation26_spill]] %s3135_s29  ;;  %s46_s20 = ssub.s32 %s2143_s22, %s3135_s29 }
  0x32   : > { %3075 = sst [smem:[#allocation25_spill]] %s3074_s6  ;;  %p2349_p0 = por %p145_p4, %p57_p12 }
  0x33   : > { %p43_p1 = scmp.ge.s32.totalorder %s3137_s27, 2  ;;  %p151_p10 = scmp.eq.s32.totalorder %s1589_s19, 7 }
  0x34   : > { %s3078_s30 = scalar_select %p2349_p0, 1, 0 }
  0x35   : > { %s171_s5 = sand.u32 1, %s2123_s17   ;;  %s1593_s12 = sshll.u32 %s2143_s22, 4 }
  0x36   : > { %3079 = sst [smem:[#allocation27_spill]] %s3078_s30  ;;  %s3139_s27 = smov (%p43_p1, %s3137_s27), 0 }
  0x37   : > { %3080 = sst [smem:[#allocation28_spill]] %s3139_s27  ;;  %p2360_p2 = por %p151_p10, %p63_p13 }
  0x38   : > { %s45_s2 = ssub.s32 %s2147_s23, %s3139_s27  ;;  %s1592_s29 = sshll.u32 %s171_s5, 7 }
  0x39   : > { %s3081_s1 = scalar_select %p2360_p2, 1, 0 }
  0x3a   : > { %s47_s18 = sor.u32 %s46_s20, %s45_s2  ;;  %s3083_s4 = ssub.s32 %s2139_s21, %s3131_s26 }
  0x3b   : > { %3082 = sst [smem:[#allocation29_spill]] %s3081_s1  ;;  %s75_s30 = sor.u32 %s3083_s4, %s45_s2 }
  0x3c   : > { %p48_p12 = scmp.eq.s32.totalorder %s47_s18, 0  ;;  %p76_p3 = scmp.eq.s32.totalorder %s75_s30, 0 }
  0x3d   : > { %s3084_s19 = sshll.u32 %s2147_s23, 5  ;;  %s3085_s13 = sadd.s32 1, %s2111_s14 }
  0x3e   : > { %s180_s22 = sadd.s32 %s3084_s19, %s1593_s12  ;;  %s175_s6 = scalar_lea.vmem [#allocation5], %s1592_s29 }
  0x3f   : > { %s2372_s15 = scalar_select %p48_p12, %s2123_s17, %s50_s3  }
  0x40   : > { %s2377_s25 = scalar_select %p76_p3, %s2111_s14, %s3085_s13  }
  0x41   : > { %s1595_s1 = sshll.u32 %s180_s22, 3  ;;  %s185_s27 = sshll.u32 %s175_s6, 4  ;;  %s186_s27 = int_to_ptr.vmem [resolvable:$true] %s185_s27 }
  0x42   : > { %s182_s20 = scalar_lea.hbm %s3028_s0, %s1595_s1  ;;  %p1690_p13 = pnand %p1703_p7, %p2329_p5 }
  0x43   : > { %s183_s2 = sshll.u32 %s182_s20, 4  ;;  %s172_s18 = scalar_lea.sflag [#allocation6], %s171_s5  ;;  %s184_s2 = int_to_ptr.hbm [resolvable:$true] %s183_s2 }
  0x44   : > { %s3086_s4 = smov 8   ;;  %s3087_s30 = smov 128  }
  0x45   : > { %1692 = dma.hbm_to_vmem [thread:$0]  (!%p1690_p13), %s184_s2, 2048, %s186_s27, %s172_s18, %s3087_s30, %s3087_s30, %s3086_s4  }
  0x46   : > { %1698 = dma.hbm_to_vmem [thread:$0]  (!%p2289_p8), %s2306_s11, 2048, %s234_s9, %s2296_s28, %s3087_s30, %s3087_s30, %s3086_s4  }
  0x47   : > { %245 = sbr.rel (%p2312_p11) target bundleno = 1035 (0x40b), region = 32  ;;  %s3089_s1 = sld [smem:[#allocation17_spill]] (!%p2312_p11) }
  0x4d   : > { %s2400_s22 = sand.u32 1, %s3089_s1  }
  0x4e   : > { %s1605_s12 = sshll.u32 %s2400_s22, 7  ;;  %s248_s5 = scalar_lea.sflag [#allocation6], %s2400_s22 }
  0x4f   : > { %s2404_s10 = scalar_lea.vmem [#allocation5], %s1605_s12 }
  0x50   : > { %2090 = dma.done.wait (%p2338_p9), %s248_s5, 2048  }
  0x51   : > { %2092 = vsyncadd (%p2338_p9), %s248_s5, 4294965248  ;;  %s3091_s7 = sld [smem:[#allocation22_spill]] }
  0x52   : > { %s3092_s28 = sld [smem:[#allocation15_spill]] }
  0x57   : > { %s257_s9 = sand.u32 1, %s3091_s7  }
  0x58   : > { %s259_s29 = sand.u32 1, %s3092_s28   ;;  %s258_s8 = scalar_lea.sflag [#allocation9], %s257_s9 }
  0x59   : > { %s1606_s3 = sshll.u32 %s259_s29, 7 }
  0x5a   : > { %s2412_s6 = scalar_lea.vmem [#allocation8], %s1606_s3 }
  0x5b   : > { %2094 = dma.done.wait (%p2271_p6), %s258_s8, 4096  }
  0x5c   : > { %2096 = vsyncadd (%p2271_p6), %s258_s8, 4294963200  ;;  %s2418_s27 = scalar_lea.vmem [#allocation10], %s1606_s3  ;;  %s2420_s19 = scalar_lea.vmem [#allocation11], %s1605_s12 }
  0x5d   : > { %s3094_s20 = sld [smem:[#allocation18_spill]] }
  0x63   : > { %p1609_p7 = scmp.ne.s32.totalorder %s3094_s20, 0 }
  0x65   : > { %312 = sbr.rel (%p1609_p7) target bundleno = 155 (0x9b), region = 48 }
  0x6a   : > { %vm313_vm0 = vcmask 7168   ;;  %v2155_v0 = vmov -inf   ;;  %v2156_v1 = vmov 0.0  }
  0x6b   : > { %314 = vst.msk [vmem:[#allocation2] sm:$0xff] %vm313_vm0, %v2155_v0 }
  0x6c   : > { %315 = vst.msk [vmem:[#allocation2 + $0x8] sm:$0xff] %vm313_vm0, %v2155_v0 }
  0x6d   : > { %316 = vst.msk [vmem:[#allocation2 + $0x10] sm:$0xff] %vm313_vm0, %v2155_v0 }
  0x6e   : > { %317 = vst.msk [vmem:[#allocation2 + $0x18] sm:$0xff] %vm313_vm0, %v2155_v0 }
  0x6f   : > { %318 = vst.msk [vmem:[#allocation2 + $0x20] sm:$0xff] %vm313_vm0, %v2155_v0 }
  0x70   : > { %319 = vst.msk [vmem:[#allocation2 + $0x28] sm:$0xff] %vm313_vm0, %v2155_v0 }
  0x71   : > { %320 = vst.msk [vmem:[#allocation2 + $0x30] sm:$0xff] %vm313_vm0, %v2155_v0 }
  0x72   : > { %321 = vst.msk [vmem:[#allocation2 + $0x38] sm:$0xff] %vm313_vm0, %v2155_v0 }
  0x73   : > { %322 = vst.msk [vmem:[#allocation2 + $0x40] sm:$0xff] %vm313_vm0, %v2155_v0 }
  0x74   : > { %323 = vst.msk [vmem:[#allocation2 + $0x48] sm:$0xff] %vm313_vm0, %v2155_v0 }
  0x75   : > { %324 = vst.msk [vmem:[#allocation2 + $0x50] sm:$0xff] %vm313_vm0, %v2155_v0 }
  0x76   : > { %325 = vst.msk [vmem:[#allocation2 + $0x58] sm:$0xff] %vm313_vm0, %v2155_v0 }
  0x77   : > { %326 = vst.msk [vmem:[#allocation2 + $0x60] sm:$0xff] %vm313_vm0, %v2155_v0 }
  0x78   : > { %327 = vst.msk [vmem:[#allocation2 + $0x68] sm:$0xff] %vm313_vm0, %v2155_v0 }
  0x79   : > { %328 = vst.msk [vmem:[#allocation2 + $0x70] sm:$0xff] %vm313_vm0, %v2155_v0 }
  0x7a   : > { %329 = vst.msk [vmem:[#allocation2 + $0x78] sm:$0xff] %vm313_vm0, %v2155_v0 }
  0x7b   : > { %330 = vst.msk [vmem:[#allocation3] sm:$0xff] %vm313_vm0, %v2156_v1 }
  0x7c   : > { %331 = vst.msk [vmem:[#allocation3 + $0x8] sm:$0xff] %vm313_vm0, %v2156_v1 }
  0x7d   : > { %332 = vst.msk [vmem:[#allocation3 + $0x10] sm:$0xff] %vm313_vm0, %v2156_v1 }
  0x7e   : > { %333 = vst.msk [vmem:[#allocation3 + $0x18] sm:$0xff] %vm313_vm0, %v2156_v1 }
  0x7f   : > { %334 = vst.msk [vmem:[#allocation3 + $0x20] sm:$0xff] %vm313_vm0, %v2156_v1 }
  0x80   : > { %335 = vst.msk [vmem:[#allocation3 + $0x28] sm:$0xff] %vm313_vm0, %v2156_v1 }
  0x81   : > { %336 = vst.msk [vmem:[#allocation3 + $0x30] sm:$0xff] %vm313_vm0, %v2156_v1 }
  0x82   : > { %337 = vst.msk [vmem:[#allocation3 + $0x38] sm:$0xff] %vm313_vm0, %v2156_v1 }
  0x83   : > { %338 = vst.msk [vmem:[#allocation3 + $0x40] sm:$0xff] %vm313_vm0, %v2156_v1 }
  0x84   : > { %339 = vst.msk [vmem:[#allocation3 + $0x48] sm:$0xff] %vm313_vm0, %v2156_v1 }
  0x85   : > { %340 = vst.msk [vmem:[#allocation3 + $0x50] sm:$0xff] %vm313_vm0, %v2156_v1 }
  0x86   : > { %341 = vst.msk [vmem:[#allocation3 + $0x58] sm:$0xff] %vm313_vm0, %v2156_v1 }
  0x87   : > { %342 = vst.msk [vmem:[#allocation3 + $0x60] sm:$0xff] %vm313_vm0, %v2156_v1 }
  0x88   : > { %343 = vst.msk [vmem:[#allocation3 + $0x68] sm:$0xff] %vm313_vm0, %v2156_v1 }
  0x89   : > { %344 = vst.msk [vmem:[#allocation3 + $0x70] sm:$0xff] %vm313_vm0, %v2156_v1 }
  0x8a   : > { %345 = vst.msk [vmem:[#allocation3 + $0x78] sm:$0xff] %vm313_vm0, %v2156_v1 }
  0x8b   : > { %346 = vst [vmem:[#allocation4 + $0x30] sm:$0xff] %v2156_v1 }
  0x8c   : > { %347 = vst [vmem:[#allocation4] sm:$0xff] %v2156_v1 }
  0x8d   : > { %348 = vst [vmem:[#allocation4 + $0x58] sm:$0xff] %v2156_v1 }
  0x8e   : > { %349 = vst [vmem:[#allocation4 + $0x18] sm:$0xff] %v2156_v1 }
  0x8f   : > { %350 = vst [vmem:[#allocation4 + $0x50] sm:$0xff] %v2156_v1 }
  0x90   : > { %351 = vst [vmem:[#allocation4 + $0x68] sm:$0xff] %v2156_v1 }
  0x91   : > { %352 = vst [vmem:[#allocation4 + $0x8] sm:$0xff] %v2156_v1 }
  0x92   : > { %353 = vst [vmem:[#allocation4 + $0x48] sm:$0xff] %v2156_v1 }
  0x93   : > { %354 = vst [vmem:[#allocation4 + $0x40] sm:$0xff] %v2156_v1 }
  0x94   : > { %355 = vst [vmem:[#allocation4 + $0x20] sm:$0xff] %v2156_v1 }
  0x95   : > { %356 = vst [vmem:[#allocation4 + $0x10] sm:$0xff] %v2156_v1 }
  0x96   : > { %357 = vst [vmem:[#allocation4 + $0x38] sm:$0xff] %v2156_v1 }
  0x97   : > { %358 = vst [vmem:[#allocation4 + $0x60] sm:$0xff] %v2156_v1 }
  0x98   : > { %359 = vst [vmem:[#allocation4 + $0x70] sm:$0xff] %v2156_v1 }
  0x99   : > { %360 = vst [vmem:[#allocation4 + $0x78] sm:$0xff] %v2156_v1 }
  0x9a   : > { %361 = vst [vmem:[#allocation4 + $0x28] sm:$0xff] %v2156_v1 }
  0x9b PF: > { %v393_v2 = vld [vmem:[%s2412_s6 + $0x78] sm:$0xff]  ;;  %v392_v3 = vld [vmem:[%s2412_s6 + $0x70] sm:$0xff]  ;;  %v391_v4 = vld [vmem:[%s2412_s6 + $0x68] sm:$0xff]  ;;  %vm811_vm1 = vcmask 7168   ;;  %s3095_s2 = sld [smem:[#allocation18_spill]] }
  0x9c   : > { %410 = vmatpush.xpose.msra.mxu0 %v393_v2  ;;  %1617 = vmatpush.xpose.msra.mxu2 %v393_v2  ;;  %v390_v5 = vld [vmem:[%s2412_s6 + $0x60] sm:$0xff]  ;;  %v389_v6 = vld [vmem:[%s2412_s6 + $0x58] sm:$0xff]  ;;  %v388_v7 = vld [vmem:[%s2412_s6 + $0x50] sm:$0xff] }
  0x9d   : > { %1618 = vmatpush.xpose.msra.mxu3 %v393_v2  ;;  %v387_v8 = vld [vmem:[%s2412_s6 + $0x48] sm:$0xff]  ;;  %v386_v9 = vld [vmem:[%s2412_s6 + $0x40] sm:$0xff]  ;;  %v385_v10 = vld [vmem:[%s2412_s6 + $0x38] sm:$0xff]  ;;  %v2157_v2 = vmov 0  }
  0x9e   : > { %v384_v11 = vld [vmem:[%s2412_s6 + $0x30] sm:$0xff]  ;;  %v383_v12 = vld [vmem:[%s2412_s6 + $0x28] sm:$0xff]  ;;  %v382_v13 = vld [vmem:[%s2412_s6 + $0x20] sm:$0xff]  ;;  %1817 = vset.pattern.permute.xlu1 %v2157_v2  ;;  %1818 = vset.pattern.permute.xlu2 %v2157_v2 }
  0x9f   : > { %v381_v14 = vld [vmem:[%s2412_s6 + $0x18] sm:$0xff]  ;;  %v380_v15 = vld [vmem:[%s2412_s6 + $0x10] sm:$0xff]  ;;  %v379_v16 = vld [vmem:[%s2412_s6 + $0x8] sm:$0xff]  ;;  %1819 = vset.pattern.permute.xlu0 %v2157_v2 }
  0xa0   : > { %411 = vmatpush.xpose.msra.mxu0 %v392_v3  ;;  %1619 = vmatpush.xpose.msra.mxu2 %v392_v3  ;;  %v378_v17 = vld [vmem:[%s2412_s6] sm:$0xff]  ;;  %v367_v19 = vld [vmem:[%s2404_s10 + $0x28] sm:$0xff]  ;;  %v368_v21 = vld [vmem:[%s2404_s10 + $0x30] sm:$0xff] }
  0xa1   : > { %1620 = vmatpush.xpose.msra.mxu3 %v392_v3  ;;  %v362_v18 = vld [vmem:[%s2404_s10] sm:$0xff]  ;;  %v363_v22 = vld [vmem:[%s2404_s10 + $0x8] sm:$0xff]  ;;  %v369_v24 = vld [vmem:[%s2404_s10 + $0x38] sm:$0xff]  ;;  %p1610_p6 = scmp.ne.s32.totalorder %s3095_s2, 1 }
  0xa2   : > { %v374_v20 = vld [vmem:[%s2404_s10 + $0x60] sm:$0xff]  ;;  %v375_v23 = vld [vmem:[%s2404_s10 + $0x68] sm:$0xff]  ;;  %v364_v25 = vld [vmem:[%s2404_s10 + $0x10] sm:$0xff] }
  0xa3   : > { %v376_v26 = vld [vmem:[%s2404_s10 + $0x70] sm:$0xff]  ;;  %v370_v27 = vld [vmem:[%s2404_s10 + $0x40] sm:$0xff]  ;;  %v365_v28 = vld [vmem:[%s2404_s10 + $0x18] sm:$0xff] }
  0xa4   : > { %412 = vmatpush.xpose.msra.mxu0 %v391_v4  ;;  %1621 = vmatpush.xpose.msra.mxu2 %v391_v4  ;;  %v377_v29 = vld [vmem:[%s2404_s10 + $0x78] sm:$0xff]  ;;  %v371_v30 = vld [vmem:[%s2404_s10 + $0x48] sm:$0xff]  ;;  %v366_v31 = vld [vmem:[%s2404_s10 + $0x20] sm:$0xff] }
  0xa5   : > { %1622 = vmatpush.xpose.msra.mxu3 %v391_v4  ;;  %v372_v32 = vld [vmem:[%s2404_s10 + $0x50] sm:$0xff]  ;;  %v373_v33 = vld [vmem:[%s2404_s10 + $0x58] sm:$0xff]  ;;  %v2535_v3 = vld [vmem:[#allocation2] sm:$0xff] }
  0xa6   : > { %v2632_v2 = vld [vmem:[#allocation2 + $0x50] sm:$0xff] }
  0xa8   : > { %413 = vmatpush.xpose.msra.mxu0 %v390_v5  ;;  %1623 = vmatpush.xpose.msra.mxu2 %v390_v5 }
  0xa9   : > { %1624 = vmatpush.xpose.msra.mxu3 %v390_v5 }
  0xac   : > { %414 = vmatpush.xpose.msra.mxu0 %v389_v6  ;;  %1625 = vmatpush.xpose.msra.mxu2 %v389_v6 }
  0xad   : > { %1626 = vmatpush.xpose.msra.mxu3 %v389_v6  ;;  %v2543_v6 = vld [vmem:[#allocation2 + $0x28] sm:$0xff] }
  0xb0   : > { %415 = vmatpush.xpose.msra.mxu0 %v388_v7  ;;  %1627 = vmatpush.xpose.msra.mxu2 %v388_v7 }
  0xb1   : > { %1628 = vmatpush.xpose.msra.mxu3 %v388_v7  ;;  %v2545_v7 = vld [vmem:[#allocation2 + $0x60] sm:$0xff] }
  0xb4   : > { %416 = vmatpush.xpose.msra.mxu0 %v387_v8  ;;  %1629 = vmatpush.xpose.msra.mxu2 %v387_v8 }
  0xb5   : > { %1630 = vmatpush.xpose.msra.mxu3 %v387_v8 }
  0xb8   : > { %417 = vmatpush.xpose.msra.mxu0 %v386_v9  ;;  %1631 = vmatpush.xpose.msra.mxu2 %v386_v9 }
  0xb9   : > { %1632 = vmatpush.xpose.msra.mxu3 %v386_v9 }
  0xbc   : > { %418 = vmatpush.xpose.msra.mxu0 %v385_v10  ;;  %1633 = vmatpush.xpose.msra.mxu2 %v385_v10 }
  0xbd   : > { %1634 = vmatpush.xpose.msra.mxu3 %v385_v10 }
  0xc0   : > { %419 = vmatpush.xpose.msra.mxu0 %v384_v11  ;;  %1635 = vmatpush.xpose.msra.mxu2 %v384_v11 }
  0xc1   : > { %1636 = vmatpush.xpose.msra.mxu3 %v384_v11 }
  0xc4   : > { %420 = vmatpush.xpose.msra.mxu0 %v383_v12  ;;  %1637 = vmatpush.xpose.msra.mxu2 %v383_v12 }
  0xc5   : > { %1638 = vmatpush.xpose.msra.mxu3 %v383_v12 }
  0xc8   : > { %421 = vmatpush.xpose.msra.mxu0 %v382_v13  ;;  %1639 = vmatpush.xpose.msra.mxu2 %v382_v13 }
  0xc9   : > { %1640 = vmatpush.xpose.msra.mxu3 %v382_v13 }
  0xcc   : > { %422 = vmatpush.xpose.msra.mxu0 %v381_v14  ;;  %1641 = vmatpush.xpose.msra.mxu2 %v381_v14 }
  0xcd   : > { %1642 = vmatpush.xpose.msra.mxu3 %v381_v14  ;;  %v2561_v14 = vld [vmem:[#allocation2 + $0x68] sm:$0xff] }
  0xd0   : > { %423 = vmatpush.xpose.msra.mxu0 %v380_v15  ;;  %1643 = vmatpush.xpose.msra.mxu2 %v380_v15 }
  0xd1   : > { %1644 = vmatpush.xpose.msra.mxu3 %v380_v15  ;;  %v2563_v15 = vld [vmem:[#allocation2 + $0x8] sm:$0xff] }
  0xd4   : > { %424 = vmatpush.xpose.msra.mxu0 %v379_v16  ;;  %1645 = vmatpush.xpose.msra.mxu2 %v379_v16 }
  0xd5   : > { %1646 = vmatpush.xpose.msra.mxu3 %v379_v16 }
  0xd8   : > { %425 = vmatpush.xpose.msra.mxu0 %v378_v17  ;;  %1647 = vmatpush.xpose.msra.mxu2 %v378_v17 }
  0xd9   : > { %1648 = vmatpush.xpose.msra.mxu3 %v378_v17 }
  0xdb   : > { %426 = vmatmul.f32.vlgmr.msra.gmra.mxu0 %v362_v18  ;;  %441 = vmatmul.f32.vlgmr.msra.gmra.mxu2 %v367_v19 }
  0xdc   : > { %462 = vmatmul.f32.vlgmr.msra.gmra.mxu3 %v374_v20 }
  0xe3   : > { %444 = vmatmul.f32.gmra.mxu2 %v368_v21  ;;  %429 = vmatmul.f32.gmra.mxu0 %v363_v22  ;;  %v2578_v21 = vld [vmem:[#allocation2 + $0x70] sm:$0xff] }
  0xe4   : > { %465 = vmatmul.f32.gmra.mxu3 %v375_v23  ;;  %v2580_v22 = vld [vmem:[#allocation2 + $0x10] sm:$0xff] }
  0xe5   : > { %v2582_v23 = vld [vmem:[#allocation2 + $0x30] sm:$0xff] }
  0xeb   : > { %447 = vmatmul.f32.gmra.mxu2 %v369_v24  ;;  %432 = vmatmul.f32.gmra.mxu0 %v364_v25 }
  0xec   : > { %468 = vmatmul.f32.gmra.mxu3 %v376_v26 }
  0xf3   : > { %450 = vmatmul.f32.gmra.mxu2 %v370_v27  ;;  %435 = vmatmul.f32.gmra.mxu0 %v365_v28 }
  0xf4   : > { %471 = vmatmul.f32.gmra.mxu3 %v377_v29 }
  0xfb   : > { %453 = vmatmul.f32.gmra.mxu2 %v371_v30  ;;  %438 = vmatmul.f32.gmra.mxu0 %v366_v31  ;;  %v2599_v31 = vld [vmem:[#allocation2 + $0x40] sm:$0xff] }
 0x103   : > { %456 = vmatmul.f32.gmra.mxu2 %v372_v32  ;;  %v2601_v32 = vld [vmem:[#allocation2 + $0x38] sm:$0xff] }
 0x10b   : > { %459 = vmatmul.f32.gmra.mxu2 %v373_v33  ;;  %v2603_v33 = vld [vmem:[#allocation2 + $0x78] sm:$0xff] }
 0x158   : > { %v427_v34 = vpop.f32.mrf.mxu0 }
 0x159   : > { %v2487_v35 = vmul.f32 0.088388346, %v427_v34 }
 0x15b   : > { %507 = vmax.xlane.f32.xlu0 %v2487_v35 }
 0x15e   : > { %v442_v36 = vpop.f32.mrf.mxu2 }
 0x15f   : > { %v2490_v37 = vmul.f32 0.088388346, %v442_v36  ;;  %v463_v38 = vpop.f32.mrf.mxu3 }
 0x160   : > { %v430_v39 = vpop.f32.mrf.mxu0  ;;  %v2492_v40 = vmul.f32 0.088388346, %v463_v38 }
 0x161   : > { %517 = vmax.xlane.f32.xlu2 %v2490_v37  ;;  %v2498_v45 = vmul.f32 0.088388346, %v430_v39 }
 0x163   : > { %531 = vmax.xlane.f32.xlu0 %v2492_v40 }
 0x166   : > { %v445_v41 = vpop.f32.mrf.mxu2 }
 0x167   : > { %v466_v42 = vpop.f32.mrf.mxu3  ;;  %v2506_v50 = vmul.f32 0.088388346, %v445_v41 }
 0x168   : > { %v2496_v43 = vmul.f32 0.088388346, %v466_v42  ;;  %v433_v44 = vpop.f32.mrf.mxu0 }
 0x169   : > { %v2502_v46 = vmul.f32 0.088388346, %v433_v44 }
 0x16a   : > { %533 = vmax.xlane.f32.xlu1 %v2496_v43 }
 0x16b   : > { %509 = vmax.xlane.f32.xlu0 %v2498_v45 }
 0x16e   : > { %v448_v47 = vpop.f32.mrf.mxu2 }
 0x16f   : > { %v469_v48 = vpop.f32.mrf.mxu3  ;;  %v2511_v52 = vmul.f32 0.088388346, %v448_v47  ;;  %v494_v47 = vld [vmem:[#allocation2 + $0x18] sm:$0xff] }
 0x170   : > { %v2504_v49 = vmul.f32 0.088388346, %v469_v48  ;;  %v436_v51 = vpop.f32.mrf.mxu0  ;;  %v495_v48 = vld [vmem:[#allocation2 + $0x20] sm:$0xff] }
 0x171   : > { %v2520_v58 = vmul.f32 0.088388346, %v436_v51 }
 0x172   : > { %535 = vmax.xlane.f32.xlu2 %v2504_v49  ;;  %511 = vmax.xlane.f32.xlu1 %v2502_v46 }
 0x173   : > { %519 = vmax.xlane.f32.xlu0 %v2506_v50 }
 0x176   : > { %v451_v53 = vpop.f32.mrf.mxu2 }
 0x177   : > { %v2513_v54 = vmul.f32 0.088388346, %v451_v53  ;;  %v472_v55 = vpop.f32.mrf.mxu3 }
 0x178   : > { %v2515_v56 = vmul.f32 0.088388346, %v472_v55  ;;  %v439_v57 = vpop.f32.mrf.mxu0  ;;  %v2623_v55 = vld [vmem:[#allocation2 + $0x48] sm:$0xff] }
 0x179   : > { %v2522_v59 = vmul.f32 0.088388346, %v439_v57 }
 0x17a   : > { %523 = vmax.xlane.f32.xlu2 %v2513_v54  ;;  %521 = vmax.xlane.f32.xlu1 %v2511_v52 }
 0x17b   : > { %537 = vmax.xlane.f32.xlu0 %v2515_v56 }
 0x17e   : > { %v454_v60 = vpop.f32.mrf.mxu2 }
 0x17f   : > { %v2524_v61 = vmul.f32 0.088388346, %v454_v60 }
 0x182   : > { %513 = vmax.xlane.f32.xlu1 %v2520_v58  ;;  %515 = vmax.xlane.f32.xlu2 %v2522_v59 }
 0x183   : > { %525 = vmax.xlane.f32.xlu0 %v2524_v61 }
 0x186   : > { %v457_v62 = vpop.f32.mrf.mxu2 }
 0x187   : > { %v2529_v63 = vmul.f32 0.088388346, %v457_v62 }
 0x18a   : > { %527 = vmax.xlane.f32.xlu1 %v2529_v63 }
 0x18e   : > { %v460_v0 = vpop.f32.mrf.mxu2 }
 0x18f   : > { %v2532_v1 = vmul.f32 0.088388346, %v460_v0 }
 0x191   : > { %529 = vmax.xlane.f32.xlu2 %v2532_v1 }
 0x1ce   : > { %v508_v4 = vpop.xlane.xlu0 %507 }
 0x1cf   : > { %v2538_v5 = vmax.f32 %v2535_v3, %v508_v4 }
 0x1d1   : > { %1037 = vst.msk [vmem:[#allocation2] sm:$0xff] %vm811_vm1, %v2538_v5  ;;  %605 = vperm.xlu1 %1817, %v2538_v5  }
 0x1d4   : > { %v518_v8 = vpop.xlane.xlu2 %517 }
 0x1d5   : > { %v2548_v9 = vmax.f32 %v2543_v6, %v518_v8 }
 0x1d6   : > { %v532_v10 = vpop.xlane.xlu0 %531 }
 0x1d7   : > { %v2551_v11 = vmax.f32 %v2545_v7, %v532_v10  ;;  %v560_v12 = vsub.f32 %v2543_v6, %v2548_v9  ;;  %1042 = vst.msk [vmem:[#allocation2 + $0x28] sm:$0xff] %vm811_vm1, %v2548_v9  ;;  %v555_v10 = vsub.f32 %v2535_v3, %v2538_v5  ;;  %v409_v5 = vld [vmem:[%s2418_s27 + $0x78] sm:$0xff]  ;;  %v400_v6 = vld [vmem:[%s2418_s27 + $0x30] sm:$0xff] }
 0x1d8   : > { %1649 = vmatpush.msra.mxu1 %v409_v5  ;;  %940 = vmatpush.msrb.mxu0 %v409_v5 }
 0x1d9   : > { %v567_v13 = vsub.f32 %v2545_v7, %v2551_v11  ;;  %1049 = vst.msk [vmem:[#allocation2 + $0x60] sm:$0xff] %vm811_vm1, %v2551_v11  ;;  %1650 = vmatpush.msrb.mxu3 %v409_v5  ;;  %v401_v5 = vld [vmem:[%s2418_s27 + $0x38] sm:$0xff] }
 0x1da   : > { %v397_v7 = vld [vmem:[%s2418_s27 + $0x18] sm:$0xff] }
 0x1dd   : > { %v534_v16 = vpop.xlane.xlu1 %533 }
 0x1de   : > { %v2566_v17 = vmax.f32 %v2561_v14, %v534_v16  ;;  %v510_v18 = vpop.xlane.xlu0 %509  ;;  %v2644_v16 = vld [vmem:[#allocation2 + $0x58] sm:$0xff] }
 0x1df   : > { %v2569_v19 = vmax.f32 %v2563_v15, %v510_v18 }
 0x1e0   : > { %v568_v20 = vsub.f32 %v2561_v14, %v2566_v17  ;;  %1050 = vst.msk [vmem:[#allocation2 + $0x68] sm:$0xff] %vm811_vm1, %v2566_v17 }
 0x1e1   : > { %1038 = vst.msk [vmem:[#allocation2 + $0x8] sm:$0xff] %vm811_vm1, %v2569_v19  ;;  %610 = vperm.xlu1 %1817, %v2569_v19  }
 0x1e5   : > { %v536_v24 = vpop.xlane.xlu2 %535  ;;  %v512_v25 = vpop.xlane.xlu1 %511 }
 0x1e6   : > { %v2585_v26 = vmax.f32 %v2578_v21, %v536_v24  ;;  %v541_v27 = vmax.f32 %v2580_v22, %v512_v25  ;;  %v520_v28 = vpop.xlane.xlu0 %519  ;;  %v571_v24 = vmul.f32 1.442695, %v555_v10  ;;  %v404_v10 = vld [vmem:[%s2418_s27 + $0x50] sm:$0xff] }
 0x1e7   : > { %v2589_v29 = vmax.f32 %v2582_v23, %v520_v28 }
 0x1e8   : > { %v569_v30 = vsub.f32 %v2578_v21, %v2585_v26  ;;  %1051 = vst.msk [vmem:[#allocation2 + $0x70] sm:$0xff] %vm811_vm1, %v2585_v26  ;;  %615 = vperm.xlu2 %1818, %v541_v27   ;;  %v557_v28 = vsub.f32 %v2580_v22, %v541_v27  ;;  %1820 = vpow2.f32 %v571_v24 }
 0x1e9   : > { %1039 = vst.msk [vmem:[#allocation2 + $0x10] sm:$0xff] %vm811_vm1, %v541_v27  ;;  %635 = vperm.xlu1 %1817, %v2589_v29   ;;  %v561_v27 = vsub.f32 %v2582_v23, %v2589_v29 }
 0x1ea   : > { %1043 = vst.msk [vmem:[#allocation2 + $0x30] sm:$0xff] %vm811_vm1, %v2589_v29 }
 0x1ed   : > { %v524_v34 = vpop.xlane.xlu2 %523  ;;  %v522_v36 = vpop.xlane.xlu1 %521 }
 0x1ee   : > { %v2606_v38 = vmax.f32 %v2599_v31, %v524_v34  ;;  %v2609_v39 = vmax.f32 %v2601_v32, %v522_v36  ;;  %v538_v41 = vpop.xlane.xlu0 %537  ;;  %v575_v34 = vmul.f32 1.442695, %v557_v28 }
 0x1ef   : > { %v2612_v42 = vmax.f32 %v2603_v33, %v538_v41  ;;  %v2656_v41 = vpop.eup %1820 }
 0x1f0   : > { %1045 = vst.msk [vmem:[#allocation2 + $0x40] sm:$0xff] %vm811_vm1, %v2606_v38  ;;  %1822 = vpow2.f32 %v575_v34 }
 0x1f1   : > { %1044 = vst.msk [vmem:[#allocation2 + $0x38] sm:$0xff] %vm811_vm1, %v2609_v39  ;;  %645 = vperm.xlu1 %1817, %v2606_v38   ;;  %v570_v44 = vsub.f32 %v2603_v33, %v2612_v42 }
 0x1f2   : > { %1052 = vst.msk [vmem:[#allocation2 + $0x78] sm:$0xff] %vm811_vm1, %v2612_v42 }
 0x1f5   : > { %v514_v51 = vpop.xlane.xlu1 %513  ;;  %v516_v53 = vpop.xlane.xlu2 %515 }
 0x1f6   : > { %v542_v57 = vmax.f32 %v494_v47, %v514_v51  ;;  %v543_v60 = vmax.f32 %v495_v48, %v516_v53  ;;  %v526_v62 = vpop.xlane.xlu0 %525  ;;  %v407_v51 = vld [vmem:[%s2418_s27 + $0x68] sm:$0xff]  ;;  %v556_v53 = vsub.f32 %v2563_v15, %v2569_v19  ;;  %v2668_v23 = vpop.eup %1822  ;;  %v562_v15 = vsub.f32 %v2601_v32, %v2609_v39  ;;  %v402_v32 = vld [vmem:[%s2418_s27 + $0x40] sm:$0xff] }
 0x1f7   : > { %v2627_v0 = vmax.f32 %v2623_v55, %v526_v62  ;;  %v405_v62 = vld [vmem:[%s2418_s27 + $0x58] sm:$0xff] }
 0x1f8   : > { %1040 = vst.msk [vmem:[#allocation2 + $0x18] sm:$0xff] %vm811_vm1, %v542_v57  ;;  %620 = vperm.xlu0 %1819, %v542_v57   ;;  %625 = vperm.xlu2 %1818, %v543_v60   ;;  %v558_v3 = vsub.f32 %v494_v47, %v542_v57  ;;  %v559_v22 = vsub.f32 %v495_v48, %v543_v60  ;;  %v408_v47 = vld [vmem:[%s2418_s27 + $0x70] sm:$0xff]  ;;  %v406_v57 = vld [vmem:[%s2418_s27 + $0x60] sm:$0xff]  ;;  %v573_v29 = vmul.f32 1.442695, %v556_v53 }
 0x1f9   : > { %1041 = vst.msk [vmem:[#allocation2 + $0x20] sm:$0xff] %vm811_vm1, %v543_v60  ;;  %1651 = vmatpush.msra.mxu1 %v408_v47  ;;  %941 = vmatpush.msrb.mxu0 %v408_v47  ;;  %v583_v60 = vmul.f32 1.442695, %v561_v27  ;;  %v564_v19 = vsub.f32 %v2623_v55, %v2627_v0  ;;  %v585_v24 = vmul.f32 1.442695, %v562_v15  ;;  %v398_v27 = vld [vmem:[%s2418_s27 + $0x20] sm:$0xff] }
 0x1fa   : > { %1046 = vst.msk [vmem:[#allocation2 + $0x48] sm:$0xff] %vm811_vm1, %v2627_v0  ;;  %v577_v36 = vmul.f32 1.442695, %v558_v3  ;;  %v579_v48 = vmul.f32 1.442695, %v559_v22  ;;  %1652 = vmatpush.msrb.mxu3 %v408_v47  ;;  %v394_v53 = vld [vmem:[%s2418_s27] sm:$0xff] }
 0x1fb   : > { %1653 = vmatpush.msra.mxu1 %v407_v51  ;;  %942 = vmatpush.msrb.mxu0 %v407_v51  ;;  %v589_v28 = vmul.f32 1.442695, %v564_v19  ;;  %v581_v55 = vmul.f32 1.442695, %v560_v12 }
 0x1fc   : > { %1824 = vpow2.f32 %v577_v36  ;;  %1654 = vmatpush.msrb.mxu3 %v407_v51  ;;  %v395_v51 = vld [vmem:[%s2418_s27 + $0x8] sm:$0xff] }
 0x1fd   : > { %v528_v4 = vpop.xlane.xlu1 %527  ;;  %1655 = vmatpush.msra.mxu1 %v406_v57  ;;  %943 = vmatpush.msrb.mxu0 %v406_v57  ;;  %1826 = vpow2.f32 %v579_v48 }
 0x1fe   : > { %v2635_v8 = vmax.f32 %v2632_v2, %v528_v4  ;;  %1656 = vmatpush.msrb.mxu3 %v406_v57  ;;  %1828 = vpow2.f32 %v583_v60 }
 0x1ff   : > { %1657 = vmatpush.msra.mxu1 %v405_v62  ;;  %1830 = vpow2.f32 %v573_v29  ;;  %944 = vmatpush.msrb.mxu0 %v405_v62 }
 0x200   : > { %1047 = vst.msk [vmem:[#allocation2 + $0x50] sm:$0xff] %vm811_vm1, %v2635_v8  ;;  %650 = vperm.xlu0 %1819, %v2627_v0   ;;  %655 = vperm.xlu1 %1817, %v2635_v8   ;;  %v565_v3 = vsub.f32 %v2632_v2, %v2635_v8  ;;  %1832 = vpow2.f32 %v585_v24  ;;  %v399_v2 = vld [vmem:[%s2418_s27 + $0x28] sm:$0xff]  ;;  %v595_v8 = vmul.f32 1.442695, %v567_v13 }
 0x201   : > { %630 = vperm.xlu2 %1818, %v2548_v9   ;;  %1658 = vmatpush.msrb.mxu3 %v405_v62  ;;  %1834 = vpow2.f32 %v589_v28  ;;  %v563_v9 = vsub.f32 %v2599_v31, %v2606_v38 }
 0x202   : > { %v2671_v4 = vpop.eup %1824  ;;  %1659 = vmatpush.msra.mxu1 %v404_v10  ;;  %945 = vmatpush.msrb.mxu0 %v404_v10  ;;  %1836 = vpow2.f32 %v581_v55  ;;  %v591_v12 = vmul.f32 1.442695, %v565_v3 }
 0x203   : > { %1660 = vmatpush.msrb.mxu3 %v404_v10  ;;  %v587_v22 = vmul.f32 1.442695, %v563_v9 }
 0x204   : > { %v530_v18 = vpop.xlane.xlu2 %529  ;;  %1838 = vpow2.f32 %v591_v12 }
 0x205   : > { %v2647_v25 = vmax.f32 %v2644_v16, %v530_v18  ;;  %v403_v18 = vld [vmem:[%s2418_s27 + $0x48] sm:$0xff]  ;;  %1840 = vpow2.f32 %v595_v8 }
 0x206   : > { %1661 = vmatpush.msra.mxu1 %v403_v18  ;;  %946 = vmatpush.msrb.mxu0 %v403_v18  ;;  %1842 = vpow2.f32 %v587_v22 }
 0x207   : > { %1048 = vst.msk [vmem:[#allocation2 + $0x58] sm:$0xff] %vm811_vm1, %v2647_v25  ;;  %1662 = vmatpush.msrb.mxu3 %v403_v18  ;;  %v566_v47 = vsub.f32 %v2644_v16, %v2647_v25 }
 0x208   : > { %675 = vperm.xlu0 %1819, %v2585_v26   ;;  %680 = vperm.xlu1 %1817, %v2612_v42  }
 0x209   : > { %640 = vperm.xlu2 %1818, %v2609_v39   ;;  %v2683_v39 = vpop.eup %1826  ;;  %1663 = vmatpush.msra.mxu1 %v402_v32  ;;  %v593_v13 = vmul.f32 1.442695, %v566_v47 }
 0x20a   : > { %v2688_v0 = vpop.eup %1828  ;;  %947 = vmatpush.msrb.mxu0 %v402_v32  ;;  %1664 = vmatpush.msrb.mxu3 %v402_v32 }
 0x20b   : > { %v2693_v34 = vpop.eup %1830  ;;  %1665 = vmatpush.msra.mxu1 %v401_v5  ;;  %1844 = vpow2.f32 %v593_v13 }
 0x20c   : > { %948 = vmatpush.msrb.mxu0 %v401_v5  ;;  %1666 = vmatpush.msrb.mxu3 %v401_v5  ;;  %v2705_v36 = vpop.eup %1832 }
 0x20d   : > { %1667 = vmatpush.msra.mxu1 %v400_v6  ;;  %v2708_v31 = vpop.eup %1834 }
 0x20e   : > { %949 = vmatpush.msrb.mxu0 %v400_v6  ;;  %1668 = vmatpush.msrb.mxu3 %v400_v6  ;;  %v2710_v38 = vpop.eup %1836 }
 0x20f   : > { %1669 = vmatpush.msra.mxu1 %v399_v2  ;;  %v2720_v16 = vpop.eup %1838 }
 0x210   : > { %665 = vperm.xlu0 %1819, %v2551_v11   ;;  %846 = vperm.xlu1 %1817, %v2656_v41   ;;  %v396_v11 = vld [vmem:[%s2418_s27 + $0x10] sm:$0xff] }
 0x211   : > { %670 = vperm.xlu2 %1818, %v2566_v17   ;;  %950 = vmatpush.msrb.mxu0 %v399_v2 }
 0x212   : > { %1671 = vmatpush.msra.mxu1 %v398_v27  ;;  %1670 = vmatpush.msrb.mxu3 %v399_v2 }
 0x213   : > { %951 = vmatpush.msrb.mxu0 %v398_v27 }
 0x214   : > { %1673 = vmatpush.msra.mxu1 %v397_v7  ;;  %1672 = vmatpush.msrb.mxu3 %v398_v27 }
 0x215   : > { %952 = vmatpush.msrb.mxu0 %v397_v7 }
 0x216   : > { %1675 = vmatpush.msra.mxu1 %v396_v11  ;;  %1674 = vmatpush.msrb.mxu3 %v397_v7 }
 0x217   : > { %953 = vmatpush.msrb.mxu0 %v396_v11 }
 0x218   : > { %856 = vperm.xlu0 %1819, %v2668_v23   ;;  %861 = vperm.xlu1 %1817, %v2671_v4  }
 0x219   : > { %660 = vperm.xlu2 %1818, %v2647_v25   ;;  %v2722_v25 = vpop.eup %1840  ;;  %1677 = vmatpush.msra.mxu1 %v395_v51 }
 0x21a   : > { %v2725_v48 = vpop.eup %1842  ;;  %954 = vmatpush.msrb.mxu0 %v395_v51  ;;  %1676 = vmatpush.msrb.mxu3 %v396_v11 }
 0x21b   : > { %1679 = vmatpush.msra.mxu1 %v394_v53  ;;  %v2730_v57 = vpop.eup %1844 }
 0x21c   : > { %955 = vmatpush.msrb.mxu0 %v394_v53  ;;  %1678 = vmatpush.msrb.mxu3 %v395_v51 }
 0x21e   : > { %1680 = vmatpush.msrb.mxu3 %v394_v53 }
 0x220   : > { %876 = vperm.xlu1 %1817, %v2688_v0   ;;  %866 = vperm.xlu0 %1819, %v2683_v39  }
 0x221   : > { %851 = vperm.xlu2 %1818, %v2693_v34  }
 0x228   : > { %891 = vperm.xlu1 %1817, %v2708_v31   ;;  %881 = vperm.xlu0 %1819, %v2705_v36  }
 0x229   : > { %871 = vperm.xlu2 %1818, %v2710_v38  }
 0x230   : > { %906 = vperm.xlu1 %1817, %v2722_v25   ;;  %896 = vperm.xlu0 %1819, %v2720_v16  }
 0x231   : > { %886 = vperm.xlu2 %1818, %v2725_v48  }
 0x239   : > { %901 = vperm.xlu2 %1818, %v2730_v57  }
 0x242   : > { %v616_v60 = vpop.permute.xlu2 %615 }
 0x243   : > { %v685_v29 = vsub.f32 %v2502_v46, %v616_v60  ;;  %v606_v62 = vpop.permute.xlu1 %605 }
 0x244   : > { %v683_v15 = vsub.f32 %v2487_v35, %v606_v62 }
 0x245   : > { %v703_v19 = vmul.f32 1.442695, %v685_v29 }
 0x246   : > { %v699_v10 = vmul.f32 1.442695, %v683_v15 }
 0x247   : > { %1846 = vpow2.f32 %v703_v19 }
 0x248   : > { %1848 = vpow2.f32 %v699_v10 }
 0x24d   : > { %v2735_v18 = vpop.eup %1846 }
 0x24e   : > { %v1849_v24 = vpop.eup %1848  ;;  %962 = vmatmul.f32.vlgmr.msra.gmra.mxu1 %v2735_v18 }
 0x24f   : > { %956 = vmatmul.f32.vlgmr.msrb.gmra.mxu0 %v1849_v24 }
 0x252   : > { %v626_v32 = vpop.permute.xlu2 %625 }
 0x253   : > { %v611_v28 = vpop.permute.xlu1 %610 }
 0x254   : > { %v684_v55 = vsub.f32 %v2498_v45, %v611_v28 }
 0x256   : > { %v701_v3 = vmul.f32 1.442695, %v684_v55 }
 0x258   : > { %1850 = vpow2.f32 %v701_v3 }
 0x25b   : > { %v631_v46 = vpop.permute.xlu2 %630  ;;  %v636_v9 = vpop.permute.xlu1 %635 }
 0x25c   : > { %v688_v5 = vsub.f32 %v2490_v37, %v631_v46  ;;  %v687_v37 = vsub.f32 %v2522_v59, %v626_v32 }
 0x25e   : > { %v1851_v35 = vpop.eup %1850  ;;  %v709_v6 = vmul.f32 1.442695, %v688_v5  ;;  %v707_v53 = vmul.f32 1.442695, %v687_v37 }
 0x25f   : > { %765 = vadd.xlane.f32.xlu1 %v1851_v35  ;;  %959 = vmatmul.f32.gmra.mxu0 %v1851_v35 }
 0x260   : > { %1852 = vpow2.f32 %v709_v6 }
 0x262   : > { %763 = vadd.xlane.f32.xlu2 %v1849_v24 }
 0x263   : > { %v641_v12 = vpop.permute.xlu2 %640  ;;  %v646_v45 = vpop.permute.xlu1 %645 }
 0x264   : > { %v690_v13 = vsub.f32 %v2511_v52, %v641_v12  ;;  %v689_v52 = vsub.f32 %v2506_v50, %v636_v9  ;;  %v691_v50 = vsub.f32 %v2513_v54, %v646_v45 }
 0x266   : > { %v1853_v2 = vpop.eup %1852  ;;  %v713_v60 = vmul.f32 1.442695, %v690_v13  ;;  %v711_v55 = vmul.f32 1.442695, %v689_v52  ;;  %v597_v13 = vmul.f32 1.442695, %v568_v20 }
 0x267   : > { %v731_v52 = vld [vmem:[#allocation3] sm:$0xff] }
 0x26a   : > { %773 = vadd.xlane.f32.xlu2 %v1853_v2  ;;  %v621_v8 = vpop.permute.xlu0 %620 }
 0x26b   : > { %v686_v22 = vsub.f32 %v2520_v58, %v621_v8  ;;  %v671_v27 = vpop.permute.xlu2 %670 }
 0x26c   : > { %v696_v47 = vsub.f32 %v2496_v43, %v671_v27 }
 0x26d   : > { %v705_v7 = vmul.f32 1.442695, %v686_v22 }
 0x26e   : > { %v725_v11 = vmul.f32 1.442695, %v696_v47 }
 0x26f   : > { %1854 = vpow2.f32 %v705_v7  ;;  %v601_v7 = vmul.f32 1.442695, %v570_v44 }
 0x270   : > { %1856 = vpow2.f32 %v725_v11 }
 0x271   : > { %1858 = vpow2.f32 %v707_v53  ;;  %v830_v53 = vld [vmem:[#allocation4 + $0x58] sm:$0xff] }
 0x272   : > { %v651_v51 = vpop.permute.xlu0 %650  ;;  %v656_v29 = vpop.permute.xlu1 %655  ;;  %1860 = vpow2.f32 %v713_v60 }
 0x273   : > { %v693_v32 = vsub.f32 %v2529_v63, %v656_v29  ;;  %v715_v63 = vmul.f32 1.442695, %v691_v50  ;;  %v661_v9 = vpop.permute.xlu2 %660  ;;  %v692_v27 = vsub.f32 %v2524_v61, %v651_v51  ;;  %v599_v61 = vmul.f32 1.442695, %v569_v30  ;;  %v828_v29 = vld [vmem:[#allocation4 + $0x30] sm:$0xff] }
 0x274   : > { %v694_v22 = vsub.f32 %v2532_v1, %v661_v9 }
 0x275   : > { %v1855_v62 = vpop.eup %1854  ;;  %v719_v5 = vmul.f32 1.442695, %v693_v32  ;;  %v717_v45 = vmul.f32 1.442695, %v692_v27 }
 0x276   : > { %v1857_v15 = vpop.eup %1856  ;;  %965 = vmatmul.f32.gmra.mxu1 %v1855_v62  ;;  %v721_v54 = vmul.f32 1.442695, %v694_v22  ;;  %v831_v22 = vld [vmem:[#allocation4 + $0x18] sm:$0xff] }
 0x277   : > { %789 = vadd.xlane.f32.xlu1 %v1857_v15  ;;  %995 = vmatmul.f32.vlgmr.msrb.gmra.mxu3 %v1857_v15  ;;  %v1859_v19 = vpop.eup %1858 }
 0x278   : > { %v1861_v10 = vpop.eup %1860 }
 0x27a   : > { %v676_v43 = vpop.permute.xlu0 %675  ;;  %v681_v24 = vpop.permute.xlu1 %680 }
 0x27b   : > { %v697_v58 = vsub.f32 %v2504_v49, %v676_v43  ;;  %v698_v28 = vsub.f32 %v2515_v56, %v681_v24  ;;  %v852_v42 = vpop.permute.xlu2 %851 }
 0x27d   : > { %v727_v59 = vmul.f32 1.442695, %v697_v58  ;;  %v729_v49 = vmul.f32 1.442695, %v698_v28  ;;  %v747_v28 = vmul.f32 %v2656_v41, %v731_v52  ;;  %v744_v41 = vld [vmem:[#allocation3 + $0x68] sm:$0xff] }
 0x27e   : > { %968 = vmatmul.f32.gmra.mxu1 %v1859_v19 }
 0x27f   : > { %1862 = vpow2.f32 %v727_v59  ;;  %777 = vadd.xlane.f32.xlu1 %v1861_v10  ;;  %v732_v59 = vld [vmem:[#allocation3 + $0x8] sm:$0xff] }
 0x280   : > { %1864 = vpow2.f32 %v711_v55 }
 0x282   : > { %v666_v3 = vpop.permute.xlu0 %665  ;;  %v847_v1 = vpop.permute.xlu1 %846 }
 0x283   : > { %v695_v46 = vsub.f32 %v2492_v40, %v666_v3  ;;  %v2770_v51 = vpop.permute.xlu2 %871  ;;  %v924_v43 = vmul.f32 %v847_v1, %v828_v29  ;;  %v745_v1 = vld [vmem:[#allocation3 + $0x70] sm:$0xff] }
 0x285   : > { %v1863_v35 = vpop.eup %1862  ;;  %v723_v6 = vmul.f32 1.442695, %v695_v46  ;;  %v829_v46 = vld [vmem:[#allocation4] sm:$0xff] }
 0x286   : > { %791 = vadd.xlane.f32.xlu2 %v1863_v35  ;;  %971 = vmatmul.f32.gmra.mxu1 %v1853_v2  ;;  %v1865_v56 = vpop.eup %1864 }
 0x287   : > { %1866 = vpow2.f32 %v723_v6  ;;  %771 = vadd.xlane.f32.xlu1 %v1859_v19  ;;  %998 = vmatmul.f32.gmra.mxu3 %v1863_v35  ;;  %v925_v35 = vmul.f32 %v852_v42, %v829_v46 }
 0x288   : > { %1868 = vpow2.f32 %v719_v5  ;;  %v736_v5 = vld [vmem:[#allocation3 + $0x28] sm:$0xff] }
 0x289   : > { %1870 = vpow2.f32 %v729_v49  ;;  %v752_v49 = vmul.f32 %v2710_v38, %v736_v5 }
 0x28a   : > { %1872 = vpow2.f32 %v715_v63  ;;  %v862_v33 = vpop.permute.xlu1 %861  ;;  %v857_v60 = vpop.permute.xlu0 %856 }
 0x28b   : > { %1874 = vpow2.f32 %v721_v54  ;;  %v2774_v30 = vpop.permute.xlu2 %886 }
 0x28c   : > { %1876 = vpow2.f32 %v717_v45 }
 0x28d   : > { %v1867_v12 = vpop.eup %1866  ;;  %1878 = vpow2.f32 %v601_v7 }
 0x28e   : > { %v1869_v8 = vpop.eup %1868  ;;  %787 = vadd.xlane.f32.xlu0 %v1867_v12  ;;  %769 = vadd.xlane.f32.xlu2 %v1855_v62  ;;  %1880 = vpow2.f32 %v599_v61  ;;  %v926_v62 = vmul.f32 %v857_v60, %v830_v53  ;;  %v832_v61 = vld [vmem:[#allocation4 + $0x50] sm:$0xff] }
 0x28f   : > { %v1871_v40 = vpop.eup %1870  ;;  %974 = vmatmul.f32.gmra.mxu1 %v1865_v56  ;;  %783 = vadd.xlane.f32.xlu1 %v1869_v8  ;;  %1882 = vpow2.f32 %v597_v13 }
 0x290   : > { %1001 = vmatmul.f32.gmra.mxu3 %v1871_v40  ;;  %v1873_v2 = vpop.eup %1872 }
 0x291   : > { %v1875_v47 = vpop.eup %1874 }
 0x292   : > { %v1877_v11 = vpop.eup %1876 }
 0x293   : > { %v2756_v37 = vpop.eup %1878  ;;  %v2778_v58 = vpop.permute.xlu2 %901 }
 0x294   : > { %v2762_v44 = vpop.eup %1880 }
 0x295   : > { %v1883_v26 = vpop.eup %1882  ;;  %v761_v42 = vmul.f32 %v2762_v44, %v745_v1  ;;  %v746_v1 = vld [vmem:[#allocation3 + $0x78] sm:$0xff] }
 0x296   : > { %775 = vadd.xlane.f32.xlu0 %v1865_v56  ;;  %779 = vadd.xlane.f32.xlu2 %v1873_v2  ;;  %v867_v56 = vpop.permute.xlu0 %866  ;;  %v760_v9 = vmul.f32 %v1883_v26, %v744_v41 }
 0x297   : > { %977 = vmatmul.f32.gmra.mxu1 %v1861_v10  ;;  %v748_v10 = vmul.f32 %v2693_v34, %v732_v59  ;;  %v928_v60 = vmul.f32 %v867_v56, %v832_v61  ;;  %v836_v61 = vld [vmem:[#allocation4 + $0x40] sm:$0xff] }
 0x29e   : > { %767 = vadd.xlane.f32.xlu0 %v2735_v18  ;;  %785 = vadd.xlane.f32.xlu2 %v1875_v47  ;;  %v2764_v18 = vpop.permute.xlu1 %876  ;;  %v2787_v54 = vpop.permute.xlu0 %881 }
 0x29f   : > { %980 = vmatmul.f32.gmra.mxu1 %v1873_v2  ;;  %v927_v2 = vmul.f32 %v862_v33, %v831_v22 }
 0x2a6   : > { %793 = vadd.xlane.f32.xlu0 %v1871_v40  ;;  %v2772_v21 = vpop.permute.xlu1 %891  ;;  %v738_v40 = vld [vmem:[#allocation3 + $0x38] sm:$0xff]  ;;  %v2792_v13 = vpop.permute.xlu0 %896 }
 0x2a7   : > { %983 = vmatmul.f32.gmra.mxu1 %v1877_v11  ;;  %v754_v38 = vmul.f32 %v2705_v36, %v738_v40 }
 0x2a8   : > { %921 = vperm.xlu1 %1817, %v2756_v37  }
 0x2ae   : > { %781 = vadd.xlane.f32.xlu0 %v1877_v11  ;;  %v2776_v15 = vpop.permute.xlu1 %906  ;;  %v735_v11 = vld [vmem:[#allocation3 + $0x20] sm:$0xff] }
 0x2af   : > { %986 = vmatmul.f32.gmra.mxu1 %v1869_v8 }
 0x2b6   : > { %916 = vperm.xlu2 %1818, %v2762_v44   ;;  %v833_v44 = vld [vmem:[#allocation4 + $0x68] sm:$0xff] }
 0x2b7   : > { %989 = vmatmul.f32.gmra.mxu1 %v1875_v47 }
 0x2bf   : > { %992 = vmatmul.f32.gmra.mxu1 %v1867_v12 }
 0x2c2   : > { %911 = vperm.xlu0 %1819, %v1883_v26   ;;  %v751_v26 = vmul.f32 %v2683_v39, %v735_v11  ;;  %v842_v11 = vld [vmem:[#allocation4 + $0x78] sm:$0xff] }
 0x2cb   : > { %v963_v14 = vpop.f32.mrf.mxu1 }
 0x2cc   : > { %v1007_v17 = vadd.f32 %v963_v14, %v926_v62  ;;  %v957_v20 = vpop.f32.mrf.mxu0  ;;  %v743_v14 = vld [vmem:[#allocation3 + $0x60] sm:$0xff] }
 0x2cd   : > { %v1005_v19 = vadd.f32 %v957_v20, %v924_v43  ;;  %v741_v20 = vld [vmem:[#allocation3 + $0x50] sm:$0xff] }
 0x2ce   : > { %1023 = vst [vmem:[#allocation4 + $0x58] sm:$0xff] %v1007_v17  ;;  %v734_v17 = vld [vmem:[#allocation3 + $0x18] sm:$0xff] }
 0x2cf   : > { %1021 = vst [vmem:[#allocation4 + $0x30] sm:$0xff] %v1005_v19  ;;  %v759_v19 = vmul.f32 %v2722_v25, %v743_v14  ;;  %v750_v39 = vmul.f32 %v2671_v4, %v734_v17  ;;  %v739_v25 = vld [vmem:[#allocation3 + $0x40] sm:$0xff]  ;;  %v834_v4 = vld [vmem:[#allocation4 + $0x8] sm:$0xff] }
 0x2d0   : > { %v930_v56 = vmul.f32 %v2764_v18, %v834_v4  ;;  %v840_v4 = vld [vmem:[#allocation4 + $0x60] sm:$0xff] }
 0x2d2   : > { %v766_v24 = vpop.xlane.xlu1 %765 }
 0x2d3   : > { %v796_v32 = vadd.f32 %v766_v24, %v748_v10  ;;  %v757_v10 = vmul.f32 %v2720_v16, %v741_v20  ;;  %v929_v24 = vmul.f32 %v2770_v51, %v833_v44  ;;  %v755_v51 = vmul.f32 %v2725_v48, %v739_v25  ;;  %v740_v20 = vld [vmem:[#allocation3 + $0x48] sm:$0xff] }
 0x2d4   : > { %v756_v44 = vmul.f32 %v2708_v31, %v740_v20 }
 0x2d5   : > { %813 = vst.msk [vmem:[#allocation3 + $0x8] sm:$0xff] %vm811_vm1, %v796_v32  ;;  %v764_v55 = vpop.xlane.xlu2 %763 }
 0x2d6   : > { %v795_v3 = vadd.f32 %v764_v55, %v747_v28 }
 0x2d8   : > { %812 = vst.msk [vmem:[#allocation3] sm:$0xff] %vm811_vm1, %v795_v3 }
 0x2dc   : > { %v960_v6 = vpop.f32.mrf.mxu0 }
 0x2dd   : > { %v774_v50 = vpop.xlane.xlu2 %773  ;;  %v1006_v63 = vadd.f32 %v960_v6, %v925_v35  ;;  %v737_v35 = vld [vmem:[#allocation3 + $0x30] sm:$0xff] }
 0x2de   : > { %v800_v34 = vadd.f32 %v774_v50, %v752_v49  ;;  %v753_v16 = vmul.f32 %v2688_v0, %v737_v35  ;;  %v835_v0 = vld [vmem:[#allocation4 + $0x48] sm:$0xff] }
 0x2df   : > { %1022 = vst [vmem:[#allocation4] sm:$0xff] %v1006_v63  ;;  %v931_v18 = vmul.f32 %v2787_v54, %v835_v0  ;;  %v932_v54 = vmul.f32 %v2774_v30, %v836_v61 }
 0x2e0   : > { %817 = vst.msk [vmem:[#allocation3 + $0x28] sm:$0xff] %vm811_vm1, %v800_v34 }
 0x2ea   : > { %v790_v12 = vpop.xlane.xlu1 %789 }
 0x2eb   : > { %v808_v8 = vadd.f32 %v790_v12, %v760_v9  ;;  %v733_v12 = vld [vmem:[#allocation3 + $0x10] sm:$0xff] }
 0x2ec   : > { %v749_v48 = vmul.f32 %v2668_v23, %v733_v12  ;;  %v762_v23 = vmul.f32 %v2756_v37, %v746_v1  ;;  %v837_v37 = vld [vmem:[#allocation4 + $0x20] sm:$0xff] }
 0x2ed   : > { %825 = vst.msk [vmem:[#allocation3 + $0x68] sm:$0xff] %vm811_vm1, %v808_v8  ;;  %v742_v8 = vld [vmem:[#allocation3 + $0x58] sm:$0xff] }
 0x2ee   : > { %v758_v40 = vmul.f32 %v2730_v57, %v742_v8  ;;  %v843_v57 = vld [vmem:[#allocation4 + $0x28] sm:$0xff] }
 0x2f2   : > { %v778_v27 = vpop.xlane.xlu1 %777 }
 0x2f3   : > { %v802_v45 = vadd.f32 %v778_v27, %v754_v38  ;;  %v966_v47 = vpop.f32.mrf.mxu1 }
 0x2f4   : > { %v1008_v7 = vadd.f32 %v966_v47, %v927_v2 }
 0x2f5   : > { %819 = vst.msk [vmem:[#allocation3 + $0x38] sm:$0xff] %vm811_vm1, %v802_v45 }
 0x2f6   : > { %1024 = vst [vmem:[#allocation4 + $0x18] sm:$0xff] %v1008_v7 }
 0x2f9   : > { %v792_v53 = vpop.xlane.xlu2 %791 }
 0x2fa   : > { %v772_v36 = vpop.xlane.xlu1 %771  ;;  %v809_v33 = vadd.f32 %v792_v53, %v761_v42  ;;  %v2806_v50 = vpop.f32.mrf.mxu3 }
 0x2fb   : > { %v799_v29 = vadd.f32 %v772_v36, %v751_v26  ;;  %v969_v62 = vpop.f32.mrf.mxu1 }
 0x2fc   : > { %826 = vst.msk [vmem:[#allocation3 + $0x70] sm:$0xff] %vm811_vm1, %v809_v33  ;;  %v1009_v43 = vadd.f32 %v969_v62, %v928_v60 }
 0x2fd   : > { %816 = vst.msk [vmem:[#allocation3 + $0x20] sm:$0xff] %vm811_vm1, %v799_v29 }
 0x2fe   : > { %1025 = vst [vmem:[#allocation4 + $0x50] sm:$0xff] %v1009_v43 }
 0x301   : > { %v788_v59 = vpop.xlane.xlu0 %787  ;;  %v770_v52 = vpop.xlane.xlu2 %769 }
 0x302   : > { %v807_v32 = vadd.f32 %v788_v59, %v759_v19  ;;  %v784_v28 = vpop.xlane.xlu1 %783  ;;  %v798_v55 = vadd.f32 %v770_v52, %v750_v39  ;;  %v933_v59 = vmul.f32 %v2772_v21, %v837_v37  ;;  %v838_v52 = vld [vmem:[#allocation4 + $0x10] sm:$0xff] }
 0x303   : > { %v805_v3 = vadd.f32 %v784_v28, %v757_v10  ;;  %v972_v46 = vpop.f32.mrf.mxu1 }
 0x304   : > { %824 = vst.msk [vmem:[#allocation3 + $0x60] sm:$0xff] %vm811_vm1, %v807_v32  ;;  %v1010_v5 = vadd.f32 %v972_v46, %v929_v24  ;;  %v934_v24 = vmul.f32 %v2792_v13, %v838_v52 }
 0x305   : > { %822 = vst.msk [vmem:[#allocation3 + $0x50] sm:$0xff] %vm811_vm1, %v805_v3  ;;  %v841_v3 = vld [vmem:[#allocation4 + $0x70] sm:$0xff] }
 0x306   : > { %815 = vst.msk [vmem:[#allocation3 + $0x18] sm:$0xff] %vm811_vm1, %v798_v55  ;;  %v839_v55 = vld [vmem:[#allocation4 + $0x38] sm:$0xff] }
 0x307   : > { %1026 = vst [vmem:[#allocation4 + $0x68] sm:$0xff] %v1010_v5  ;;  %v935_v46 = vmul.f32 %v2778_v58, %v839_v55 }
 0x309   : > { %v776_v49 = vpop.xlane.xlu0 %775  ;;  %v780_v6 = vpop.xlane.xlu2 %779 }
 0x30a   : > { %v801_v63 = vadd.f32 %v776_v49, %v753_v16  ;;  %v803_v34 = vadd.f32 %v780_v6, %v755_v51  ;;  %v999_v2 = vpop.f32.mrf.mxu3  ;;  %v936_v16 = vmul.f32 %v2776_v15, %v840_v4 }
 0x30c   : > { %818 = vst.msk [vmem:[#allocation3 + $0x30] sm:$0xff] %vm811_vm1, %v801_v63  ;;  %v975_v41 = vpop.f32.mrf.mxu1 }
 0x30d   : > { %820 = vst.msk [vmem:[#allocation3 + $0x40] sm:$0xff] %vm811_vm1, %v803_v34  ;;  %v1011_v9 = vadd.f32 %v975_v41, %v930_v56 }
 0x30f   : > { %1027 = vst [vmem:[#allocation4 + $0x8] sm:$0xff] %v1011_v9 }
 0x311   : > { %v768_v22 = vpop.xlane.xlu0 %767  ;;  %v786_v38 = vpop.xlane.xlu2 %785 }
 0x312   : > { %v797_v27 = vadd.f32 %v768_v22, %v749_v48  ;;  %v806_v45 = vadd.f32 %v786_v38, %v758_v40 }
 0x313   : > { %v1002_v29 = vpop.f32.mrf.mxu3 }
 0x314   : > { %814 = vst.msk [vmem:[#allocation3 + $0x10] sm:$0xff] %vm811_vm1, %v797_v27  ;;  %v978_v47 = vpop.f32.mrf.mxu1 }
 0x315   : > { %823 = vst.msk [vmem:[#allocation3 + $0x58] sm:$0xff] %vm811_vm1, %v806_v45  ;;  %v1012_v7 = vadd.f32 %v978_v47, %v931_v18 }
 0x317   : > { %1028 = vst [vmem:[#allocation4 + $0x48] sm:$0xff] %v1012_v7 }
 0x319   : > { %v794_v42 = vpop.xlane.xlu0 %793  ;;  %v917_v26 = vpop.permute.xlu2 %916 }
 0x31a   : > { %v810_v53 = vadd.f32 %v794_v42, %v762_v23  ;;  %v922_v60 = vpop.permute.xlu1 %921  ;;  %v938_v36 = vmul.f32 %v917_v26, %v842_v11 }
 0x31b   : > { %v939_v33 = vmul.f32 %v922_v60, %v843_v57 }
 0x31c   : > { %827 = vst.msk [vmem:[#allocation3 + $0x78] sm:$0xff] %vm811_vm1, %v810_v53  ;;  %v1019_v62 = vadd.f32 %v999_v2, %v938_v36  ;;  %v981_v43 = vpop.f32.mrf.mxu1 }
 0x31d   : > { %v1020_v14 = vadd.f32 %v1002_v29, %v939_v33  ;;  %v1013_v17 = vadd.f32 %v981_v43, %v932_v54 }
 0x31e   : > { %1035 = vst [vmem:[#allocation4 + $0x78] sm:$0xff] %v1019_v62 }
 0x31f   : > { %1036 = vst [vmem:[#allocation4 + $0x28] sm:$0xff] %v1020_v14 }
 0x320   : > { %1029 = vst [vmem:[#allocation4 + $0x40] sm:$0xff] %v1013_v17 }
 0x321   : > { %v782_v19 = vpop.xlane.xlu0 %781 }
 0x322   : > { %v804_v39 = vadd.f32 %v782_v19, %v756_v44 }
 0x324   : > { %821 = vst.msk [vmem:[#allocation3 + $0x48] sm:$0xff] %vm811_vm1, %v804_v39  ;;  %v984_v30 = vpop.f32.mrf.mxu1 }
 0x325   : > { %v1014_v10 = vadd.f32 %v984_v30, %v933_v59 }
 0x327   : > { %1030 = vst [vmem:[#allocation4 + $0x20] sm:$0xff] %v1014_v10 }
 0x32c   : > { %v987_v32 = vpop.f32.mrf.mxu1 }
 0x32d   : > { %v1015_v28 = vadd.f32 %v987_v32, %v934_v24 }
 0x32f   : > { %1031 = vst [vmem:[#allocation4 + $0x10] sm:$0xff] %v1015_v28 }
 0x334   : > { %v990_v31 = vpop.f32.mrf.mxu1  ;;  %v912_v5 = vpop.permute.xlu0 %911 }
 0x335   : > { %v1016_v35 = vadd.f32 %v990_v31, %v935_v46  ;;  %v937_v25 = vmul.f32 %v912_v5, %v841_v3 }
 0x337   : > { %1032 = vst [vmem:[#allocation4 + $0x38] sm:$0xff] %v1016_v35  ;;  %v1018_v21 = vadd.f32 %v2806_v50, %v937_v25 }
 0x339   : > { %1034 = vst [vmem:[#allocation4 + $0x70] sm:$0xff] %v1018_v21 }
 0x33b   : > { %1056 = sbr.rel (%p1610_p6) target bundleno = 1010 (0x3f2), region = 52 }
 0x33c   : > { %v993_v51 = vpop.f32.mrf.mxu1 }
 0x33d   : > { %v1017_v13 = vadd.f32 %v993_v51, %v936_v16 }
 0x33f   : > { %1033 = vst [vmem:[#allocation4 + $0x60] sm:$0xff] %v1017_v13 }
 0x340   : > { %v1077_v49 = vld [vmem:[#allocation3 + $0x20] sm:$0xff]  ;;  %v1075_v6 = vld [vmem:[#allocation3 + $0x10] sm:$0xff]  ;;  %v2158_v63 = vmov 0   ;;  %v1078_v50 = vld [vmem:[#allocation3 + $0x28] sm:$0xff] }
 0x341   : > { %v1073_v58 = vld [vmem:[#allocation3] sm:$0xff]  ;;  %1886 = vset.pattern.permute.xlu2 %v2158_v63  ;;  %1885 = vset.pattern.permute.xlu1 %v2158_v63  ;;  %v1076_v34 = vld [vmem:[#allocation3 + $0x18] sm:$0xff]  ;;  %v1074_v56 = vld [vmem:[#allocation3 + $0x8] sm:$0xff] }
 0x342   : > { %1884 = vset.pattern.permute.xlu0 %v2158_v63  ;;  %1111 = vperm.xlu2 %1886, %v1077_v49   ;;  %v1081_v15 = vld [vmem:[#allocation3 + $0x40] sm:$0xff]  ;;  %v1080_v41 = vld [vmem:[#allocation3 + $0x38] sm:$0xff]  ;;  %v1079_v9 = vld [vmem:[#allocation3 + $0x30] sm:$0xff] }
 0x343   : > { %1101 = vperm.xlu1 %1885, %v1075_v6   ;;  %1091 = vperm.xlu0 %1884, %v1073_v58   ;;  %v1084_v12 = vld [vmem:[#allocation3 + $0x58] sm:$0xff]  ;;  %v1083_v8 = vld [vmem:[#allocation3 + $0x50] sm:$0xff]  ;;  %v1082_v0 = vld [vmem:[#allocation3 + $0x48] sm:$0xff] }
 0x344   : > { %v1087_v48 = vld [vmem:[#allocation3 + $0x70] sm:$0xff]  ;;  %v1086_v40 = vld [vmem:[#allocation3 + $0x68] sm:$0xff]  ;;  %v1085_v22 = vld [vmem:[#allocation3 + $0x60] sm:$0xff] }
 0x345   : > { %v1088_v38 = vld [vmem:[#allocation3 + $0x78] sm:$0xff]  ;;  %v1061_v42 = vld [vmem:[#allocation4 + $0x50] sm:$0xff]  ;;  %v1062_v37 = vld [vmem:[#allocation4 + $0x68] sm:$0xff] }
 0x346   : > { %v1065_v35 = vld [vmem:[#allocation4 + $0x40] sm:$0xff] }
 0x34a   : > { %1116 = vperm.xlu2 %1886, %v1078_v50  }
 0x34b   : > { %1106 = vperm.xlu1 %1885, %v1076_v34   ;;  %1096 = vperm.xlu0 %1884, %v1074_v56  }
 0x352   : > { %1131 = vperm.xlu2 %1886, %v1081_v15  }
 0x353   : > { %1126 = vperm.xlu1 %1885, %v1080_v41   ;;  %1121 = vperm.xlu0 %1884, %v1079_v9  }
 0x35a   : > { %1146 = vperm.xlu2 %1886, %v1084_v12  }
 0x35b   : > { %1141 = vperm.xlu1 %1885, %v1083_v8   ;;  %1136 = vperm.xlu0 %1884, %v1082_v0  }
 0x362   : > { %1161 = vperm.xlu2 %1886, %v1087_v48  }
 0x363   : > { %1156 = vperm.xlu1 %1885, %v1086_v40   ;;  %1151 = vperm.xlu0 %1884, %v1085_v22  }
 0x36b   : > { %1166 = vperm.xlu0 %1884, %v1088_v38  }
 0x39c   : > { %v1112_v2 = vpop.permute.xlu2 %1111 }
 0x39d   : > { %1887 = vrcp.f32 %v1112_v2  ;;  %v1240_v47 = vand.u32 2147483648, %v1112_v2  ;;  %vm1234_vm2 = vweird.f32 %v1112_v2  ;;  %v1238_v1 = vand.u32 2147483647, %v1112_v2 }
 0x39f   : > { %v1241_v61 = vor.u32 1.1754944e-38, %v1240_v47  ;;  %vm1239_vm5 = vcmp.eq.f32.partialorder %v1238_v1, 8.507059e+37 }
 0x3a3   : > { %v1888_v27 = vpop.eup %1887 }
 0x3a4   : > { %v1230_v45 = vmul.f32 %v1888_v27, %v1112_v2  ;;  %v1117_v18 = vpop.permute.xlu2 %1116  ;;  %vm1235_vm3 = vweird.f32 %v1888_v27 }
 0x3a5   : > { %1889 = vrcp.f32 %v1117_v18  ;;  %vm1236_vm4 = vmor %vm1234_vm2, %vm1235_vm3  ;;  %vm1249_vm6 = vweird.f32 %v1117_v18  ;;  %v1255_v54 = vand.u32 2147483648, %v1117_v18  ;;  %v1253_v62 = vand.u32 2147483647, %v1117_v18 }
 0x3a6   : > { %v1231_v7 = vsub.f32 1.0, %v1230_v45 }
 0x3a7   : > { %v1256_v14 = vor.u32 1.1754944e-38, %v1255_v54  ;;  %vm1254_vm9 = vcmp.eq.f32.partialorder %v1253_v62, 8.507059e+37 }
 0x3a8   : > { %v1232_v11 = vmul.f32 %v1888_v27, %v1231_v7 }
 0x3aa   : > { %v1233_v23 = vadd.f32 %v1888_v27, %v1232_v11 }
 0x3ab   : > { %v1890_v57 = vpop.eup %1889 }
 0x3ac   : > { %v1237_v26 = vsel %vm1236_vm4, %v1888_v27, %v1233_v23  ;;  %v1245_v53 = vmul.f32 %v1890_v57, %v1117_v18  ;;  %v1132_v60 = vpop.permute.xlu2 %1131  ;;  %vm1250_vm7 = vweird.f32 %v1890_v57  ;;  %v1068_v18 = vld [vmem:[#allocation4 + $0x38] sm:$0xff] }
 0x3ad   : > { %v1242_v36 = vsel %vm1239_vm5, %v1241_v61, %v1237_v26  ;;  %1891 = vrcp.f32 %v1132_v60  ;;  %vm1251_vm8 = vmor %vm1249_vm6, %vm1250_vm7  ;;  %vm1294_vm10 = vweird.f32 %v1132_v60  ;;  %v1298_v30 = vand.u32 2147483647, %v1132_v60  ;;  %v1059_v61 = vld [vmem:[#allocation4 + $0x58] sm:$0xff] }
 0x3ae   : > { %v1243_v33 = vmul.f32 %v1242_v36, %v1061_v42  ;;  %v1246_v29 = vsub.f32 1.0, %v1245_v53  ;;  %v1300_v10 = vand.u32 2147483648, %v1132_v60 }
 0x3af   : > { %vm1299_vm13 = vcmp.eq.f32.partialorder %v1298_v30, 8.507059e+37 }
 0x3b0   : > { %1413 = vst [vmem:[%s2420_s19 + $0x20] sm:$0xff] %v1243_v33  ;;  %v1247_v43 = vmul.f32 %v1890_v57, %v1246_v29  ;;  %v1301_v3 = vor.u32 1.1754944e-38, %v1300_v10 }
 0x3b2   : > { %v1248_v17 = vadd.f32 %v1890_v57, %v1247_v43 }
 0x3b3   : > { %v1892_v20 = vpop.eup %1891 }
 0x3b4   : > { %v1252_v44 = vsel %vm1251_vm8, %v1890_v57, %v1248_v17  ;;  %v1290_v19 = vmul.f32 %v1892_v20, %v1132_v60  ;;  %v1147_v39 = vpop.permute.xlu2 %1146  ;;  %vm1295_vm11 = vweird.f32 %v1892_v20 }
 0x3b5   : > { %v1257_v59 = vsel %vm1254_vm9, %v1256_v14, %v1252_v44  ;;  %1893 = vrcp.f32 %v1147_v39  ;;  %v1102_v52 = vpop.permute.xlu1 %1101  ;;  %v2828_v24 = vpop.permute.xlu0 %1091  ;;  %vm1296_vm12 = vmor %vm1294_vm10, %vm1295_vm11  ;;  %v1343_v46 = vand.u32 2147483647, %v1147_v39  ;;  %vm1339_vm14 = vweird.f32 %v1147_v39  ;;  %v1057_v14 = vld [vmem:[#allocation4 + $0x30] sm:$0xff] }
 0x3b6   : > { %v1258_v32 = vmul.f32 %v1257_v59, %v1062_v37  ;;  %v1291_v28 = vsub.f32 1.0, %v1290_v19  ;;  %1895 = vrcp.f32 %v1102_v52  ;;  %v1345_v16 = vand.u32 2147483648, %v1147_v39 }
 0x3b7   : > { %1897 = vrcp.f32 %v2828_v24  ;;  %vm2835_vm15 = vcmp.eq.f32.partialorder %v1343_v46, 8.507059e+37  ;;  %vm1204_vm0 = vweird.f32 %v1102_v52  ;;  %v1208_v15 = vand.u32 2147483647, %v1102_v52 }
 0x3b8   : > { %1414 = vst [vmem:[%s2420_s19 + $0x28] sm:$0xff] %v1258_v32  ;;  %v1292_v55 = vmul.f32 %v1892_v20, %v1291_v28  ;;  %v1210_v9 = vand.u32 2147483648, %v1102_v52  ;;  %v1178_v8 = vand.u32 2147483647, %v2828_v24  ;;  %v1180_v48 = vand.u32 2147483648, %v2828_v24 }
 0x3b9   : > { %v1346_v40 = vor.u32 1.1754944e-38, %v1345_v16  ;;  %vm2849_vm3 = vcmp.eq.f32.partialorder %v1208_v15, 8.507059e+37  ;;  %vm1174_vm4 = vweird.f32 %v2828_v24 }
 0x3ba   : > { %v1293_v31 = vadd.f32 %v1892_v20, %v1292_v55  ;;  %v1211_v7 = vor.u32 1.1754944e-38, %v1210_v9  ;;  %vm2858_vm8 = vcmp.eq.f32.partialorder %v1178_v8, 8.507059e+37  ;;  %v1181_v57 = vor.u32 1.1754944e-38, %v1180_v48  ;;  %v1058_v8 = vld [vmem:[#allocation4] sm:$0xff] }
 0x3bb   : > { %v1894_v5 = vpop.eup %1893 }
 0x3bc   : > { %v1896_v25 = vpop.eup %1895  ;;  %v1297_v21 = vsel %vm1296_vm12, %v1892_v20, %v1293_v31  ;;  %v1335_v4 = vmul.f32 %v1894_v5, %v1147_v39  ;;  %v2833_v51 = vpop.permute.xlu2 %1161  ;;  %vm1340_vm1 = vweird.f32 %v1894_v5  ;;  %v1071_v31 = vld [vmem:[#allocation4 + $0x78] sm:$0xff] }
 0x3bd   : > { %v1302_v13 = vsel %vm1299_vm13, %v1301_v3, %v1297_v21  ;;  %v1200_v6 = vmul.f32 %v1896_v25, %v1102_v52  ;;  %1899 = vrcp.f32 %v2833_v51  ;;  %v2840_v58 = vpop.permute.xlu1 %1106  ;;  %v2842_v63 = vpop.permute.xlu0 %1096  ;;  %vm1205_vm2 = vweird.f32 %v1896_v25  ;;  %vm1341_vm5 = vmor %vm1339_vm14, %vm1340_vm1 }
 0x3be   : > { %v1898_v50 = vpop.eup %1897  ;;  %v1303_v34 = vmul.f32 %v1302_v13, %v1065_v35  ;;  %v1336_v56 = vsub.f32 1.0, %v1335_v4  ;;  %1901 = vrcp.f32 %v2840_v58  ;;  %vm1206_vm7 = vmor %vm1204_vm0, %vm1205_vm2  ;;  %v1388_v36 = vand.u32 2147483647, %v2833_v51 }
 0x3bf   : > { %v1201_v41 = vsub.f32 1.0, %v1200_v6  ;;  %v1170_v12 = vmul.f32 %v1898_v50, %v2828_v24  ;;  %1903 = vrcp.f32 %v2842_v63  ;;  %vm1175_vm6 = vweird.f32 %v1898_v50 }
 0x3c0   : > { %1417 = vst [vmem:[%s2420_s19 + $0x40] sm:$0xff] %v1303_v34  ;;  %v1337_v0 = vmul.f32 %v1894_v5, %v1336_v56  ;;  %vm1176_vm9 = vmor %vm1174_vm4, %vm1175_vm6  ;;  %v1390_v20 = vand.u32 2147483648, %v2833_v51  ;;  %vm1384_vm10 = vweird.f32 %v2833_v51  ;;  %vm2883_vm12 = vcmp.eq.f32.partialorder %v1388_v36, 8.507059e+37  ;;  %v1060_v56 = vld [vmem:[#allocation4 + $0x18] sm:$0xff] }
 0x3c1   : > { %v1202_v22 = vmul.f32 %v1896_v25, %v1201_v41  ;;  %v1171_v38 = vsub.f32 1.0, %v1170_v12  ;;  %v1223_v3 = vand.u32 2147483647, %v2840_v58  ;;  %v1225_v46 = vand.u32 2147483648, %v2840_v58 }
 0x3c2   : > { %v1338_v2 = vadd.f32 %v1894_v5, %v1337_v0  ;;  %v1391_v55 = vor.u32 1.1754944e-38, %v1390_v20  ;;  %v1193_v21 = vand.u32 2147483647, %v2842_v63  ;;  %v1195_v4 = vand.u32 2147483648, %v2842_v63 }
 0x3c3   : > { %v1900_v45 = vpop.eup %1899  ;;  %v1203_v47 = vadd.f32 %v1896_v25, %v1202_v22  ;;  %v1172_v1 = vmul.f32 %v1898_v50, %v1171_v38  ;;  %vm1189_vm2 = vweird.f32 %v2842_v63 }
 0x3c4   : > { %v1342_v11 = vsel %vm1341_vm5, %v1894_v5, %v1338_v2  ;;  %v1380_v42 = vmul.f32 %v1900_v45, %v2833_v51  ;;  %v1902_v29 = vpop.eup %1901  ;;  %vm1385_vm11 = vweird.f32 %v1900_v45  ;;  %vm1194_vm5 = vcmp.eq.f32.partialorder %v1193_v21, 8.507059e+37 }
 0x3c5   : > { %v1347_v26 = vsel %vm2835_vm15, %v1346_v40, %v1342_v11  ;;  %v1207_v53 = vsel %vm1206_vm7, %v1896_v25, %v1203_v47  ;;  %v1173_v60 = vadd.f32 %v1898_v50, %v1172_v1  ;;  %v2866_v54 = vpop.permute.xlu1 %1126  ;;  %v2868_v33 = vpop.permute.xlu0 %1121  ;;  %v1215_v19 = vmul.f32 %v1902_v29, %v2840_v58  ;;  %vm1386_vm13 = vmor %vm1384_vm10, %vm1385_vm11 }
 0x3c6   : > { %v1348_v62 = vmul.f32 %v1347_v26, %v1068_v18  ;;  %v1212_v43 = vsel %vm2849_vm3, %v1211_v7, %v1207_v53  ;;  %v1381_v17 = vsub.f32 1.0, %v1380_v42  ;;  %v1904_v39 = vpop.eup %1903  ;;  %1905 = vrcp.f32 %v2866_v54 }
 0x3c7   : > { %v1213_v37 = vmul.f32 %v1212_v43, %v1059_v61  ;;  %v1177_v44 = vsel %vm1176_vm9, %v1898_v50, %v1173_v60  ;;  %v1216_v24 = vsub.f32 1.0, %v1215_v19  ;;  %v1185_v32 = vmul.f32 %v1904_v39, %v2842_v63  ;;  %v1064_v60 = vld [vmem:[#allocation4 + $0x48] sm:$0xff] }
 0x3c8   : > { %1420 = vst [vmem:[%s2420_s19 + $0x58] sm:$0xff] %v1348_v62  ;;  %v1182_v59 = vsel %vm2858_vm8, %v1181_v57, %v1177_v44  ;;  %v1382_v30 = vmul.f32 %v1900_v45, %v1381_v17  ;;  %vm1220_vm14 = vweird.f32 %v1902_v29  ;;  %1907 = vrcp.f32 %v2868_v33 }
 0x3c9   : > { %1411 = vst [vmem:[%s2420_s19 + $0x10] sm:$0xff] %v1213_v37  ;;  %v1183_v10 = vmul.f32 %v1182_v59, %v1057_v14  ;;  %v1217_v5 = vmul.f32 %v1902_v29, %v1216_v24  ;;  %v1186_v35 = vsub.f32 1.0, %v1185_v32  ;;  %vm1219_vm15 = vweird.f32 %v2840_v58  ;;  %v1063_v59 = vld [vmem:[#allocation4 + $0x8] sm:$0xff] }
 0x3ca   : > { %v1383_v28 = vadd.f32 %v1900_v45, %v1382_v30  ;;  %vm1190_vm0 = vweird.f32 %v1904_v39  ;;  %vm1221_vm1 = vmor %vm1219_vm15, %vm1220_vm14  ;;  %v1226_v58 = vor.u32 1.1754944e-38, %v1225_v46  ;;  %vm1224_vm3 = vcmp.eq.f32.partialorder %v1223_v3, 8.507059e+37 }
 0x3cb   : > { %1409 = vst [vmem:[%s2420_s19] sm:$0xff] %v1183_v10  ;;  %v1218_v13 = vadd.f32 %v1902_v29, %v1217_v5  ;;  %v1187_v49 = vmul.f32 %v1904_v39, %v1186_v35  ;;  %vm1191_vm4 = vmor %vm1189_vm2, %vm1190_vm0  ;;  %v1196_v0 = vor.u32 1.1754944e-38, %v1195_v4  ;;  %v1283_v48 = vand.u32 2147483647, %v2866_v54 }
 0x3cc   : > { %v1387_v25 = vsel %vm1386_vm13, %v1900_v45, %v1383_v28  ;;  %v1906_v50 = vpop.eup %1905  ;;  %v1285_v27 = vand.u32 2147483648, %v2866_v54  ;;  %v1268_v7 = vand.u32 2147483647, %v2868_v33  ;;  %vm1279_vm7 = vweird.f32 %v2866_v54 }
 0x3cd   : > { %v1392_v16 = vsel %vm2883_vm12, %v1391_v55, %v1387_v25  ;;  %v2899_v51 = vpop.permute.xlu1 %1141  ;;  %v2901_v6 = vpop.permute.xlu0 %1136  ;;  %v1222_v15 = vsel %vm1221_vm1, %v1902_v29, %v1218_v13  ;;  %v1188_v41 = vadd.f32 %v1904_v39, %v1187_v49  ;;  %v1275_v9 = vmul.f32 %v1906_v50, %v2866_v54 }
 0x3ce   : > { %v1393_v34 = vmul.f32 %v1392_v16, %v1071_v31  ;;  %1909 = vrcp.f32 %v2899_v51  ;;  %v1227_v12 = vsel %vm1224_vm3, %v1226_v58, %v1222_v15  ;;  %v1908_v40 = vpop.eup %1907  ;;  %vm1280_vm6 = vweird.f32 %v1906_v50  ;;  %v1067_v31 = vld [vmem:[#allocation4 + $0x10] sm:$0xff] }
 0x3cf   : > { %v1228_v22 = vmul.f32 %v1227_v12, %v1060_v56  ;;  %v1192_v63 = vsel %vm1191_vm4, %v1904_v39, %v1188_v41  ;;  %v1276_v38 = vsub.f32 1.0, %v1275_v9  ;;  %1911 = vrcp.f32 %v2901_v6  ;;  %vm1281_vm10 = vmor %vm1279_vm7, %vm1280_vm6 }
 0x3d0   : > { %1423 = vst [vmem:[%s2420_s19 + $0x70] sm:$0xff] %v1393_v34  ;;  %v1197_v2 = vsel %vm1194_vm5, %v1196_v0, %v1192_v63  ;;  %v1260_v45 = vmul.f32 %v1908_v40, %v2868_v33  ;;  %v1270_v61 = vand.u32 2147483648, %v2868_v33  ;;  %vm2918_vm8 = vcmp.eq.f32.partialorder %v1283_v48, 8.507059e+37  ;;  %v1070_v0 = vld [vmem:[#allocation4 + $0x70] sm:$0xff] }
 0x3d1   : > { %1412 = vst [vmem:[%s2420_s19 + $0x18] sm:$0xff] %v1228_v22  ;;  %v1198_v18 = vmul.f32 %v1197_v2, %v1058_v8  ;;  %v1277_v47 = vmul.f32 %v1906_v50, %v1276_v38  ;;  %vm1264_vm9 = vweird.f32 %v2868_v33  ;;  %v1286_v36 = vor.u32 1.1754944e-38, %v1285_v27 }
 0x3d2   : > { %v1261_v11 = vsub.f32 1.0, %v1260_v45  ;;  %vm1265_vm11 = vweird.f32 %v1908_v40  ;;  %vm2929_vm12 = vcmp.eq.f32.partialorder %v1268_v7, 8.507059e+37  ;;  %v1330_v17 = vand.u32 2147483648, %v2899_v51 }
 0x3d3   : > { %1410 = vst [vmem:[%s2420_s19 + $0x8] sm:$0xff] %v1198_v18  ;;  %v1278_v23 = vadd.f32 %v1906_v50, %v1277_v47  ;;  %v1271_v44 = vor.u32 1.1754944e-38, %v1270_v61  ;;  %vm1266_vm13 = vmor %vm1264_vm9, %vm1265_vm11  ;;  %v1328_v10 = vand.u32 2147483647, %v2899_v51  ;;  %vm1324_vm15 = vweird.f32 %v2899_v51  ;;  %v1069_v61 = vld [vmem:[#allocation4 + $0x60] sm:$0xff] }
 0x3d4   : > { %v1910_v1 = vpop.eup %1909  ;;  %v1262_v54 = vmul.f32 %v1908_v40, %v1261_v11  ;;  %v1331_v55 = vor.u32 1.1754944e-38, %v1330_v17  ;;  %v1315_v33 = vand.u32 2147483648, %v2901_v6  ;;  %v1313_v35 = vand.u32 2147483647, %v2901_v6 }
 0x3d5   : > { %v1320_v42 = vmul.f32 %v1910_v1, %v2899_v51  ;;  %v2924_v26 = vpop.permute.xlu1 %1156  ;;  %v2926_v53 = vpop.permute.xlu0 %1151  ;;  %v1282_v62 = vsel %vm1281_vm10, %v1906_v50, %v1278_v23  ;;  %vm1325_vm14 = vweird.f32 %v1910_v1  ;;  %vm1329_vm2 = vcmp.eq.f32.partialorder %v1328_v10, 8.507059e+37  ;;  %v1066_v51 = vld [vmem:[#allocation4 + $0x20] sm:$0xff] }
 0x3d6   : > { %1913 = vrcp.f32 %v2924_v26  ;;  %v1912_v29 = vpop.eup %1911  ;;  %v1287_v20 = vsel %vm2918_vm8, %v1286_v36, %v1282_v62  ;;  %v1263_v37 = vadd.f32 %v1908_v40, %v1262_v54  ;;  %vm1326_vm0 = vmor %vm1324_vm15, %vm1325_vm14  ;;  %vm1309_vm3 = vweird.f32 %v2901_v6  ;;  %v1072_v62 = vld [vmem:[#allocation4 + $0x28] sm:$0xff] }
 0x3d7   : > { %v1321_v14 = vsub.f32 1.0, %v1320_v42  ;;  %v1305_v19 = vmul.f32 %v1912_v29, %v2901_v6  ;;  %v1288_v39 = vmul.f32 %v1287_v20, %v1064_v60  ;;  %1915 = vrcp.f32 %v2926_v53 }
 0x3d8   : > { %v1267_v52 = vsel %vm1266_vm13, %v1908_v40, %v1263_v37  ;;  %vm1310_vm1 = vweird.f32 %v1912_v29  ;;  %v1316_v50 = vor.u32 1.1754944e-38, %v1315_v33  ;;  %vm1314_vm5 = vcmp.eq.f32.partialorder %v1313_v35, 8.507059e+37 }
 0x3d9   : > { %v1322_v30 = vmul.f32 %v1910_v1, %v1321_v14  ;;  %v1306_v24 = vsub.f32 1.0, %v1305_v19  ;;  %1416 = vst [vmem:[%s2420_s19 + $0x38] sm:$0xff] %v1288_v39  ;;  %v1272_v32 = vsel %vm2929_vm12, %v1271_v44, %v1267_v52  ;;  %vm1311_vm4 = vmor %vm1309_vm3, %vm1310_vm1  ;;  %v1373_v15 = vand.u32 2147483647, %v2924_v26 }
 0x3da   : > { %v1273_v46 = vmul.f32 %v1272_v32, %v1063_v59  ;;  %v1375_v41 = vand.u32 2147483648, %v2924_v26  ;;  %vm1369_vm7 = vweird.f32 %v2924_v26  ;;  %v1358_v38 = vand.u32 2147483647, %v2926_v53 }
 0x3db   : > { %v1323_v28 = vadd.f32 %v1910_v1, %v1322_v30  ;;  %v1307_v5 = vmul.f32 %v1912_v29, %v1306_v24  ;;  %vm1374_vm9 = vcmp.eq.f32.partialorder %v1373_v15, 8.507059e+37  ;;  %v1360_v2 = vand.u32 2147483648, %v2926_v53 }
 0x3dc   : > { %v1914_v3 = vpop.eup %1913  ;;  %1415 = vst [vmem:[%s2420_s19 + $0x30] sm:$0xff] %v1273_v46  ;;  %v1376_v63 = vor.u32 1.1754944e-38, %v1375_v41  ;;  %vm1354_vm11 = vweird.f32 %v2926_v53  ;;  %vm1359_vm13 = vcmp.eq.f32.partialorder %v1358_v38, 8.507059e+37 }
 0x3dd   : > { %v1327_v25 = vsel %vm1326_vm0, %v1910_v1, %v1323_v28  ;;  %v1365_v21 = vmul.f32 %v1914_v3, %v2924_v26  ;;  %v1167_v4 = vpop.permute.xlu0 %1166  ;;  %v1308_v13 = vadd.f32 %v1912_v29, %v1307_v5  ;;  %v1916_v56 = vpop.eup %1915  ;;  %vm1370_vm6 = vweird.f32 %v1914_v3 }
 0x3de   : > { %v1332_v16 = vsel %vm1329_vm2, %v1331_v55, %v1327_v25  ;;  %1917 = vrcp.f32 %v1167_v4  ;;  %v1350_v6 = vmul.f32 %v1916_v56, %v2926_v53  ;;  %vm1371_vm8 = vmor %vm1369_vm7, %vm1370_vm6  ;;  %vm1355_vm10 = vweird.f32 %v1916_v56 }
 0x3df   : > { %v1333_v49 = vmul.f32 %v1332_v16, %v1067_v31  ;;  %v1366_v34 = vsub.f32 1.0, %v1365_v21  ;;  %v1312_v58 = vsel %vm1311_vm4, %v1912_v29, %v1308_v13  ;;  %vm1356_vm12 = vmor %vm1354_vm11, %vm1355_vm10  ;;  %v1361_v23 = vor.u32 1.1754944e-38, %v1360_v2 }
 0x3e0   : > { %v1317_v9 = vsel %vm1314_vm5, %v1316_v50, %v1312_v58  ;;  %v1351_v40 = vsub.f32 1.0, %v1350_v6  ;;  %v1405_v57 = vand.u32 2147483648, %v1167_v4  ;;  %v1403_v60 = vand.u32 2147483647, %v1167_v4 }
 0x3e1   : > { %1419 = vst [vmem:[%s2420_s19 + $0x50] sm:$0xff] %v1333_v49  ;;  %v1367_v12 = vmul.f32 %v1914_v3, %v1366_v34  ;;  %v1318_v8 = vmul.f32 %v1317_v9, %v1066_v51  ;;  %vm1399_vm15 = vweird.f32 %v1167_v4 }
 0x3e2   : > { %v1352_v45 = vmul.f32 %v1916_v56, %v1351_v40  ;;  %v1406_v53 = vor.u32 1.1754944e-38, %v1405_v57  ;;  %vm1404_vm1 = vcmp.eq.f32.partialorder %v1403_v60, 8.507059e+37 }
 0x3e3   : > { %v1368_v48 = vadd.f32 %v1914_v3, %v1367_v12  ;;  %1418 = vst [vmem:[%s2420_s19 + $0x48] sm:$0xff] %v1318_v8 }
 0x3e4   : > { %v1918_v22 = vpop.eup %1917  ;;  %v1353_v1 = vadd.f32 %v1916_v56, %v1352_v45 }
 0x3e5   : > { %v1372_v27 = vsel %vm1371_vm8, %v1914_v3, %v1368_v48  ;;  %v1395_v18 = vmul.f32 %v1918_v22, %v1167_v4  ;;  %vm1400_vm14 = vweird.f32 %v1918_v22 }
 0x3e6   : > { %v1377_v47 = vsel %vm1374_vm9, %v1376_v63, %v1372_v27  ;;  %v1357_v42 = vsel %vm1356_vm12, %v1916_v56, %v1353_v1  ;;  %vm1401_vm0 = vmor %vm1399_vm15, %vm1400_vm14 }
 0x3e7   : > { %v1378_v7 = vmul.f32 %v1377_v47, %v1070_v0  ;;  %v1396_v11 = vsub.f32 1.0, %v1395_v18  ;;  %v1362_v36 = vsel %vm1359_vm13, %v1361_v23, %v1357_v42 }
 0x3e8   : > { %v1363_v54 = vmul.f32 %v1362_v36, %v1069_v61 }
 0x3e9   : > { %1422 = vst [vmem:[%s2420_s19 + $0x68] sm:$0xff] %v1378_v7  ;;  %v1397_v26 = vmul.f32 %v1918_v22, %v1396_v11 }
 0x3ea   : > { %1421 = vst [vmem:[%s2420_s19 + $0x60] sm:$0xff] %v1363_v54 }
 0x3eb   : > { %v1398_v29 = vadd.f32 %v1918_v22, %v1397_v26 }
 0x3ed   : > { %v1402_v43 = vsel %vm1401_vm0, %v1918_v22, %v1398_v29 }
 0x3ee   : > { %v1407_v14 = vsel %vm1404_vm1, %v1406_v53, %v1402_v43 }
 0x3ef   : > { %v1408_v17 = vmul.f32 %v1407_v14, %v1072_v62 }
 0x3f1   : > { %1424 = vst [vmem:[%s2420_s19 + $0x78] sm:$0xff] %v1408_v17 }
 0x3f2 PF: > { %s3108_s18 = sld [smem:[#allocation19_spill]]  ;;  %s1440_s16 = sshll.u32 %s2420_s19, 4  ;;  %s1441_s16 = int_to_ptr.vmem [resolvable:$true] %s1440_s16 }
 0x3f3   : > { %s3109_s4 = sld [smem:[#allocation20_spill]]  ;;  %s1426_s29 = scalar_lea.sflag [#allocation7], %s2400_s22 }
 0x3f4   : > { %s3111_s28 = sld [smem:[#allocation32_spill]] }
 0x3f8   : > { %s1612_s13 = sshll.u32 %s3108_s18, 4 }
 0x3f9   : > { %s1613_s1 = sshll.u32 %s3109_s4, 5 }
 0x3fa   : > { %s1437_s12 = sadd.s32 %s1613_s1, %s1612_s13  ;;  %s2029_s19 = scalar_lea.hbm %s3111_s28, 512 }
 0x3fb   : > { %s1614_s5 = sshll.u32 %s1437_s12, 3 }
 0x3fc   : > { %s1439_s11 = scalar_lea.hbm %s3111_s28, %s1614_s5 }
 0x3fd   : > { %s1442_s9 = sshll.u32 %s1439_s11, 4  ;;  %s1443_s9 = int_to_ptr.hbm [resolvable:$true] %s1442_s9 }
 0x3fe   : > { %s2023_s3 = sshra.s32 %s1443_s9, 4  ;;  %s2024_s3 = int_to_ptr.hbm [resolvable:$true] %s2023_s3 }
 0x3ff   : > { %s2025_s8 = scalar_lea.hbm %s2024_s3, 128  ;;  %p2030_p5 = scmp.lt.s32.totalorder %s2024_s3, %s3111_s28 }
 0x400   : > { %p2026_p8 = scmp.ne.s32.totalorder %s2024_s3, %s2025_s8  ;;  %p2031_p9 = scmp.lt.s32.totalorder %s2029_s19, %s2025_s8 }
 0x402   : > { %p2027_p11 = pnand %p2026_p8, %p2349_p0  ;;  %p2032_p1 = por %p2031_p9, %p2030_p5 }
 0x404   : > { %p2028_p4 = pneg %p2027_p11 }
 0x406   : > { %p2033_p10 = pnand %p2032_p1, %p2028_p4 }
 0x408   : > { %2036 = shalt.err (!%p2033_p10)
}
 0x409   : > { %s2159_s22 = smov 128   ;;  %s2160_s18 = smov 8  }
 0x40a   : > { %1687 = dma.vmem_to_hbm [thread:$0]  (%p2349_p0), %s1441_s16, 2048, %s1443_s9, %s1426_s29, %s2159_s22, %s2159_s22, %s2160_s18  }
 0x40b PF: > { %s3112_s4 = sld [smem:[#allocation16_spill]]  ;;  %p1704_p12 = scmp.ge.s32.totalorder %s2151_s24, 2 }
 0x40d   : > { %p1700_p3 = pnand %p1704_p12, %p2360_p2 }
 0x40f   : > { %p1701_p13 = pneg %p1700_p3 }
 0x411   : > { %s1457_s1 = sand.u32 1, %s3112_s4  }
 0x412   : > { %s1458_s12 = scalar_lea.sflag [#allocation7], %s1457_s1 }
 0x413   : > { %2098 = dma.done.wait (%p1701_p13), %s1458_s12, 2048  }
 0x414   : > { %2100 = vsyncadd (%p1701_p13), %s1458_s12, 4294965248  ;;  %s22_s24 = sadd.s32 1, %s2151_s24   ;;  %s3115_s12 = sld [smem:[#allocation15_spill]] }
 0x415   : > { %p2984_p7 = scmp.ge.s32.totalorder %s22_s24, 10   ;;  %s3116_s30 = sld [smem:[#allocation17_spill]] }
 0x416   : > { %s3117_s10 = smov %s2372_s15  ;;  %s3118_s19 = sld [smem:[#allocation21_spill]] }
 0x417   : > { %s3119_s22 = sld [smem:[#allocation26_spill]]  ;;  %s3121_s13 = smov %s2111_s14 }
 0x418   : > { %s3120_s7 = sld [smem:[#allocation28_spill]]  ;;  %s3122_s14 = smov %s2377_s25 }
 0x419   : > { %s3124_s16 = smov %s2123_s17  ;;  %s3125_s17 = smov %s3117_s10 }
 0x41a   : > { %s3126_s18 = smov %s2139_s21  ;;  %s3127_s20 = smov %s2147_s23 }
 0x41b   : > { %s3123_s15 = smov %s3116_s30  ;;  %s3128_s21 = smov %s3131_s26 }
 0x41c   :  { %21 = sbr.rel (!%p2984_p7) target bundleno = 16 (0x10), region = 109 }
 0x41e   : > { %s3129_s23 = smov %s3120_s7 }
 0x421   :  { %1464 = vsyncpa [#allocation6], 1 }
 0x422   :  { %1466 = vsyncpa [#allocation6 + $0x1], 1 }
 0x423   :  { %1467 = vsyncpa [#allocation9], 1 }
 0x424   :  { %1469 = vsyncpa [#allocation9 + $0x1], 1 }
 0x425   :  { %1470 = vsyncpa [#allocation7], 1 }
 0x426   :  { %1472 = vsyncpa [#allocation7 + $0x1], 1 }

</bundles_post_ra>
